<compile_context>
chip_gen: v7x
topology: tpu7x:2x2x1
jax: 0.10.0
libtpu: 0.0.40
codegen_flags: <defaults>
</compile_context>

<pallas_src>
import functools

import jax
import jax.numpy as jnp
from jax import lax
from jax.experimental import pallas as pl
from jax.experimental.pallas import tpu as pltpu


# ---------------------------------------------------------------------------
# static tile-size helpers
# ---------------------------------------------------------------------------
def _largest_divisor(n, cap):
    best = 1
    for d in range(1, min(n, cap) + 1):
        if n % d == 0:
            best = d
    return best


def _pick_conv_tile(n_samples, L1, max_rows=4096):
    """Largest per-grid-step sample count whose row blocks satisfy the (8,128) rule."""
    lq = L1 // 4
    cands = [tn for tn in range(1, n_samples + 1)
             if n_samples % tn == 0 and tn * L1 <= max_rows
             and (tn * L1) % 8 == 0 and (tn * lq) % 8 == 0]
    return max(cands) if cands else n_samples


def _pick_row_tile(m, cap=1024):
    cands = [d for d in range(1, min(m, cap) + 1) if m % d == 0 and d % 8 == 0]
    return max(cands) if cands else m


# ---------------------------------------------------------------------------
# Kernel 1: [Conv1d(k=3,p=1)+BN+ReLU+MaxPool(2)] x 2   (BN folded into weights)
# ---------------------------------------------------------------------------
def _conv_block_kernel(L1, x_ref, w1_ref, b1_ref, w2_ref, b2_ref, o_ref, s1, s2):
    L2 = L1 // 2

    def conv3_relu_pool(xv, w, b, L, scratch):
        R, C = xv.shape
        pos = lax.broadcasted_iota(jnp.int32, (R, 1), 0) % L
        zrow = jnp.zeros((1, C), xv.dtype)
        # halo rows (zero at per-sample boundaries)
        x_m1 = jnp.where(pos > 0, jnp.concatenate([zrow, xv[:-1, :]], axis=0), 0.0)
        x_p1 = jnp.where(pos < L - 1, jnp.concatenate([xv[1:, :], zrow], axis=0), 0.0)
        # fuse the three taps into ONE matmul: (R, 3C) @ (3C, O)
        x_cat = jnp.concatenate([x_m1, xv, x_p1], axis=-1)
        y = jnp.maximum(
            jnp.dot(x_cat, w, preferred_element_type=jnp.float32) + b, 0.0)  # conv+BN+ReLU
        # MaxPool(2): pairwise max of rows (2p, 2p+1), keep even rows (strided read)
        y_next = jnp.concatenate([y[1:, :], y[-1:, :]], axis=0)
        scratch[...] = jnp.maximum(y, y_next)
        return scratch[pl.ds(0, R // 2, stride=2), :]

    x = x_ref[...]                                                   # (TN*L1, Cin)
    p1 = conv3_relu_pool(x, w1_ref[...], b1_ref[...], L1, s1)        # (TN*L1/2, 6)
    o_ref[...] = conv3_relu_pool(p1, w2_ref[...], b2_ref[...], L2, s2)  # (TN*L1/4, 12)


def conv_stage(x_rows, w1, b1, w2, b2, *, L1, tile_samples):
    rows, cin = x_rows.shape
    n = rows // L1
    tn = tile_samples
    assert n % tn == 0 and L1 % 4 == 0
    r1 = tn * L1
    lq = L1 // 4
    return pl.pallas_call(
        functools.partial(_conv_block_kernel, L1),
        out_shape=jax.ShapeDtypeStruct((n * lq, 12), jnp.float32),
        grid_spec=pltpu.PrefetchScalarGridSpec(
            num_scalar_prefetch=0,
            grid=(n // tn,),
            in_specs=[
                pl.BlockSpec((r1, cin), lambda i: (i, 0)),
                pl.BlockSpec((3 * cin, 6), lambda i: (0, 0)),
                pl.BlockSpec((1, 6), lambda i: (0, 0)),
                pl.BlockSpec((18, 12), lambda i: (0, 0)),
                pl.BlockSpec((1, 12), lambda i: (0, 0)),
            ],
            out_specs=pl.BlockSpec((tn * lq, 12), lambda i: (i, 0)),
            scratch_shapes=[
                pltpu.VMEM((r1, 6), jnp.float32),
                pltpu.VMEM((r1 // 2, 12), jnp.float32),
            ],
        ),
        compiler_params=pltpu.CompilerParams(dimension_semantics=("parallel",)),
    )(x_rows, w1, b1, w2, b2)


# ---------------------------------------------------------------------------
# Kernel 2: LSTM layer — time-chunked grid, fused 4H-wide gate matmuls
# ---------------------------------------------------------------------------
def _lstm_chunk_kernel(Tc, H, x_ref, len_ref, wx_ref, wh_ref, b_ref, o_ref, h_sc, c_sc):
    chunk = pl.program_id(0)

    @pl.when(chunk == 0)
    def _():
        h_sc[...] = jnp.zeros_like(h_sc)
        c_sc[...] = jnp.zeros_like(c_sc)

    lengths = len_ref[...]            # (B, 1) int32
    wx = wx_ref[...]                  # (F, 4H)   gates ordered [i, f, o, g]
    wh = wh_ref[...]                  # (H, 4H)
    b = b_ref[...]                    # (1, 4H)

    # TODO(synk): hoist the x@wx projection for the whole chunk into a single
    # (Tc*B, F)@(F, 4H) matmul before the sequential recurrence.
    def step(tl, carry):
        t = chunk * Tc + tl
        x_t = x_ref[tl]               # (B, F)
        h_prev = h_sc[...]
        c_prev = c_sc[...]
        z = (jnp.dot(x_t, wx, preferred_element_type=jnp.float32)
             + jnp.dot(h_prev, wh, preferred_element_type=jnp.float32)
             + b)                     # (B, 4H)
        sig = jax.nn.sigmoid(z[:, :3 * H])        # one contiguous sigmoid slab [i|f|o]
        i_g = sig[:, 0:H]
        f_g = sig[:, H:2 * H]
        o_g = sig[:, 2 * H:3 * H]
        g_g = jnp.tanh(z[:, 3 * H:])
        c_new = f_g * c_prev + i_g * g_g
        h_new = o_g * jnp.tanh(c_new)
        valid = t < lengths                        # (B, 1) — packed-seq masking
        h_sc[...] = jnp.where(valid, h_new, h_prev)
        c_sc[...] = jnp.where(valid, c_new, c_prev)
        o_ref[tl] = jnp.where(valid, h_new, 0.0)
        return carry

    lax.fori_loop(0, Tc, step, 0)


def lstm_layer(x_tbf, lengths_b1, wx, wh, b, *, hidden_dim, time_chunk=128):
    T, B, F = x_tbf.shape
    H = hidden_dim
    Tc = _largest_divisor(T, time_chunk)
    return pl.pallas_call(
        functools.partial(_lstm_chunk_kernel, Tc, H),
        out_shape=jax.ShapeDtypeStruct((T, B, H), jnp.float32),
        grid_spec=pltpu.PrefetchScalarGridSpec(
            num_scalar_prefetch=0,
            grid=(T // Tc,),
            in_specs=[
                pl.BlockSpec((Tc, B, F), lambda c: (c, 0, 0)),
                pl.BlockSpec((B, 1), lambda c: (0, 0)),
                pl.BlockSpec((F, 4 * H), lambda c: (0, 0)),
                pl.BlockSpec((H, 4 * H), lambda c: (0, 0)),
                pl.BlockSpec((1, 4 * H), lambda c: (0, 0)),
            ],
            out_specs=pl.BlockSpec((Tc, B, H), lambda c: (c, 0, 0)),
            scratch_shapes=[pltpu.VMEM((B, H), jnp.float32),
                            pltpu.VMEM((B, H), jnp.float32)],
        ),
        compiler_params=pltpu.CompilerParams(dimension_semantics=("arbitrary",)),
    )(x_tbf, lengths_b1, wx, wh, b)


# ---------------------------------------------------------------------------
# Kernel 3: Linear + LogSoftmax(dim=-1), row-tiled
# ---------------------------------------------------------------------------
def _linear_logsoftmax_kernel(x_ref, w_ref, b_ref, o_ref):
    y = jnp.dot(x_ref[...], w_ref[...], preferred_element_type=jnp.float32) + b_ref[...]
    m = jnp.max(y, axis=-1, keepdims=True)
    z = y - m
    lse = jnp.log(jnp.sum(jnp.exp(z), axis=-1, keepdims=True))
    o_ref[...] = z - lse


def linear_logsoftmax(x2d, w, b):
    M, H = x2d.shape
    O = w.shape[-1]
    tm = _pick_row_tile(M)
    return pl.pallas_call(
        _linear_logsoftmax_kernel,
        out_shape=jax.ShapeDtypeStruct((M, O), jnp.float32),
        grid_spec=pltpu.PrefetchScalarGridSpec(
            num_scalar_prefetch=0,
            grid=(M // tm,),
            in_specs=[pl.BlockSpec((tm, H), lambda i: (i, 0)),
                      pl.BlockSpec((H, O), lambda i: (0, 0)),
                      pl.BlockSpec((1, O), lambda i: (0, 0))],
            out_specs=pl.BlockSpec((tm, O), lambda i: (i, 0)),
        ),
        compiler_params=pltpu.CompilerParams(dimension_semantics=("parallel",)),
    )(x2d, w, b)


# ---------------------------------------------------------------------------
# Parameter initialization (PyTorch shapes) + one-time kernel-ready prep
# ---------------------------------------------------------------------------
def init_params(key, *, input_channels, input_dim1, input_dim2, hidden_dim,
                output_dim, num_layers):
    ks = iter(jax.random.split(key, 64))

    def nrm(shape, scale=0.1):
        return scale * jax.random.normal(next(ks), shape, jnp.float32)

    p = {
        "conv1_w": nrm((6, input_channels, 3), 0.3),
        "conv1_b": nrm((6,), 0.1),
        "bn1_gamma": 1.0 + nrm((6,), 0.1),
        "bn1_beta": nrm((6,), 0.1),
        "bn1_mean": nrm((6,), 0.1),
        "bn1_var": 1.0 + jnp.abs(nrm((6,), 0.1)),
        "conv2_w": nrm((12, 6, 3), 0.3),
        "conv2_b": nrm((12,), 0.1),
        "bn2_gamma": 1.0 + nrm((12,), 0.1),
        "bn2_beta": nrm((12,), 0.1),
        "bn2_mean": nrm((12,), 0.1),
        "bn2_var": 1.0 + jnp.abs(nrm((12,), 0.1)),
    }
    dim_after_cov = 12 * (input_dim1 // 4)
    in_size = dim_after_cov + input_dim2
    p["lstm"] = []
    for _ in range(num_layers):
        p["lstm"].append({
            "W_ih": nrm((4 * hidden_dim, in_size), 0.1),
            "W_hh": nrm((4 * hidden_dim, hidden_dim), 0.1),
            "b_ih": nrm((4 * hidden_dim,), 0.1),
            "b_hh": nrm((4 * hidden_dim,), 0.1),
        })
        in_size = hidden_dim
    p["lin_w"] = nrm((output_dim, hidden_dim), 0.2)
    p["lin_b"] = nrm((output_dim,), 0.1)
    return p


def prep_kernel_params(p, *, num_layers, hidden_dim, input_dim1):
    """Fold BN into the conv weights, fuse/reorder LSTM gate weights to (F,4H)/(H,4H)
    with gate order [i,f,o,g], and permute the layer-0 input rows to match the
    kernel's position-major conv flatten.  Call ONCE, outside the forward path."""
    eps = 1e-5
    H = hidden_dim
    lq = input_dim1 // 4
    dim_after_cov = 12 * lq

    def fold_conv(w, b, gamma, beta, mean, var):
        a = gamma / jnp.sqrt(var + eps)
        wf = w * a[:, None, None]                                   # (O, C, 3)
        bf = a * (b - mean) + beta
        # taps stacked along contraction dim, matching [x[l-1] | x[l] | x[l+1]]
        w_cat = jnp.concatenate([wf[:, :, 0].T, wf[:, :, 1].T, wf[:, :, 2].T], axis=0)
        return w_cat.astype(jnp.float32), bf.reshape(1, -1).astype(jnp.float32)

    def reorder_gates(w):                                           # torch [i,f,g,o] -> [i,f,o,g]
        blk = w.reshape(4, H, -1)
        return jnp.concatenate([blk[0], blk[1], blk[3], blk[2]], axis=0)

    kp = {}
    kp["w1"], kp["b1"] = fold_conv(p["conv1_w"], p["conv1_b"], p["bn1_gamma"],
                                   p["bn1_beta"], p["bn1_mean"], p["bn1_var"])
    kp["w2"], kp["b2"] = fold_conv(p["conv2_w"], p["conv2_b"], p["bn2_gamma"],
                                   p["bn2_beta"], p["bn2_mean"], p["bn2_var"])

    kp["wx"], kp["wh"], kp["bg"] = [], [], []
    for l in range(num_layers):
        lp = p["lstm"][l]
        wx = reorder_gates(lp["W_ih"]).T                            # (F, 4H)
        wh = reorder_gates(lp["W_hh"]).T                            # (H, 4H)
        bg = reorder_gates((lp["b_ih"] + lp["b_hh"]).reshape(4 * H, 1)).reshape(1, 4 * H)
        if l == 0:
            # kernel feeds conv features position-major (l, c); torch is channel-major (c, l)
            F0 = wx.shape[0]
            perm_cov = (jnp.arange(12)[None, :] * lq + jnp.arange(lq)[:, None]).reshape(-1)
            perm = jnp.concatenate(
                [perm_cov, dim_after_cov + jnp.arange(F0 - dim_after_cov)])
            wx = wx[perm, :]
        kp["wx"].append(wx.astype(jnp.float32))
        kp["wh"].append(wh.astype(jnp.float32))
        kp["bg"].append(bg.astype(jnp.float32))

    kp["wl"] = p["lin_w"].T.astype(jnp.float32)                     # (H, O)
    kp["bl"] = p["lin_b"].reshape(1, -1).astype(jnp.float32)        # (1, O)
    return kp


# ---------------------------------------------------------------------------
# Full forward (Pallas pipeline)
# ---------------------------------------------------------------------------
def net_forward(kp, x1, x2, lengths, *, input_channels, input_dim1, hidden_dim,
                output_dim, num_layers, biFlag=False):
    assert not biFlag  # TODO(synk): bidirectional packed reverse pass not implemented.
    batch, T = x1.shape[0], x1.shape[1]
    L1 = input_dim1
    lq = L1 // 4
    N = batch * T

    # --- conv stage: rows = (sample, position), lanes = channels -------------
    x_rows = (x1.reshape(N, input_channels, L1)
                .transpose(0, 2, 1)
                .reshape(N * L1, input_channels)
                .astype(jnp.float32))
    tn = _pick_conv_tile(N, L1)
    conv_out = conv_stage(x_rows, kp["w1"], kp["b1"], kp["w2"], kp["b2"],
                          L1=L1, tile_samples=tn)                    # (N*lq, 12)
    # position-major flatten — layer-0 LSTM weights were permuted to match, so this
    # is a contiguous reshape (no channel-major transpose between stages).
    feat = conv_out.reshape(batch, T, lq * 12)
    feat = jnp.concatenate([feat, x2.astype(jnp.float32)], axis=2)   # (B, T, F)

    # --- LSTM stack (time-major, chunked grid, fused gates) ------------------
    h = feat.transpose(1, 0, 2)                                      # (T, B, F)
    lengths_b1 = lengths.astype(jnp.int32).reshape(batch, 1)
    for l in range(num_layers):
        h = lstm_layer(h, lengths_b1, kp["wx"][l], kp["wh"][l], kp["bg"][l],
                       hidden_dim=hidden_dim)

    # --- Linear + LogSoftmax --------------------------------------------------
    y2d = h.transpose(1, 0, 2).reshape(batch * T, hidden_dim)
    logp = linear_logsoftmax(y2d, kp["wl"], kp["bl"]).reshape(batch, T, output_dim)
    return logp, lengths


# ---------------------------------------------------------------------------
# Pure-JAX reference (same eval-mode torch semantics) for verification
# ---------------------------------------------------------------------------
def reference_forward(p, x1, x2, lengths, *, input_channels, input_dim1,
                      hidden_dim, output_dim, num_layers):
    batch, T = x1.shape[0], x1.shape[1]
    L1 = input_dim1
    dim_after_cov = 12 * (L1 // 4)
    N = batch * T
    eps = 1e-5

    def conv_bn_relu_pool(x, w, b, gamma, beta, mean, var):
        Nn, C, L = x.shape
        xp = jnp.pad(x, ((0, 0), (0, 0), (1, 1)))
        y = jnp.broadcast_to(b[None, :, None], (Nn, w.shape[0], L)).astype(jnp.float32)
        for k in range(3):
            y = y + jnp.einsum("ncl,oc->nol", xp[:, :, k:k + L], w[:, :, k])
        a = gamma / jnp.sqrt(var + eps)
        y = a[None, :, None] * (y - mean[None, :, None]) + beta[None, :, None]
        y = jnp.maximum(y, 0.0)
        return y.reshape(Nn, w.shape[0], L // 2, 2).max(axis=-1)

    x = x1.reshape(N, input_channels, L1).astype(jnp.float32)
    h = conv_bn_relu_pool(x, p["conv1_w"], p["conv1_b"], p["bn1_gamma"],
                          p["bn1_beta"], p["bn1_mean"], p["bn1_var"])
    h = conv_bn_relu_pool(h, p["conv2_w"], p["conv2_b"], p["bn2_gamma"],
                          p["bn2_beta"], p["bn2_mean"], p["bn2_var"])
    feat = h.reshape(batch, T, dim_after_cov)
    feat = jnp.concatenate([feat, x2.astype(jnp.float32)], axis=2)

    H = hidden_dim
    xs = feat
    for l in range(num_layers):
        lp = p["lstm"][l]

        def step(carry, t, lp=lp, xs=xs):
            hh, cc = carry
            x_t = xs[:, t, :]
            z = x_t @ lp["W_ih"].T + hh @ lp["W_hh"].T + lp["b_ih"] + lp["b_hh"]
            i = jax.nn.sigmoid(z[:, 0:H])
            f = jax.nn.sigmoid(z[:, H:2 * H])
            g = jnp.tanh(z[:, 2 * H:3 * H])
            o = jax.nn.sigmoid(z[:, 3 * H:4 * H])
            c_new = f * cc + i * g
            h_new = o * jnp.tanh(c_new)
            valid = (t < lengths)[:, None]
            hh = jnp.where(valid, h_new, hh)
            cc = jnp.where(valid, c_new, cc)
            return (hh, cc), jnp.where(valid, h_new, 0.0)

        init = (jnp.zeros((batch, H), jnp.float32), jnp.zeros((batch, H), jnp.float32))
        _, outs = lax.scan(step, init, jnp.arange(T))
        xs = outs.transpose(1, 0, 2)

    y = xs @ p["lin_w"].T + p["lin_b"]
    return jax.nn.log_softmax(y, axis=2)


# ---------------------------------------------------------------------------
if __name__ == "__main__":
    key = jax.random.PRNGKey(0)
    batch, T = 2, 8
    input_channels, input_dim1, input_dim2 = 4, 16, 5
    hidden_dim, output_dim, num_layers = 32, 7, 1

    k1, k2, k3 = jax.random.split(key, 3)
    x1 = jax.random.normal(k1, (batch, T, input_channels, input_dim1), jnp.float32)
    x2 = jax.random.normal(k2, (batch, T, input_dim2), jnp.float32)
    lengths = jnp.array([8, 5], dtype=jnp.int32)   # sorted descending (pack_padded_sequence)

    params = init_params(k3, input_channels=input_channels, input_dim1=input_dim1,
                         input_dim2=input_dim2, hidden_dim=hidden_dim,
                         output_dim=output_dim, num_layers=num_layers)
    # one-time weight prep (BN folding, gate fusion/reorder, feature permutation)
    kp = prep_kernel_params(params, num_layers=num_layers, hidden_dim=hidden_dim,
                            input_dim1=input_dim1)

    fwd = jax.jit(functools.partial(
        net_forward, input_channels=input_channels, input_dim1=input_dim1,
        hidden_dim=hidden_dim, output_dim=output_dim, num_layers=num_layers,
        biFlag=False))

    out, out_len = fwd(kp, x1, x2, lengths)
    out = jax.block_until_ready(out)
    assert out.shape == (batch, T, output_dim)

    ref = reference_forward(params, x1, x2, lengths,
                            input_channels=input_channels, input_dim1=input_dim1,
                            hidden_dim=hidden_dim, output_dim=output_dim,
                            num_layers=num_layers)
    err = float(jnp.max(jnp.abs(out - ref)))
    assert err < 2e-3, f"Pallas vs reference mismatch: {err}"

    print("KERNEL_OK")
</pallas_src>

<mosaic_0001>
module attributes {stable_mosaic.version = 11 : i64} {
  func.func @_conv_block_kernel(%arg0: i32, %arg1: memref<256x4xf32, #tpu.memory_space<vmem>>, %arg2: memref<12x6xf32, #tpu.memory_space<vmem>>, %arg3: memref<1x6xf32, #tpu.memory_space<vmem>>, %arg4: memref<18x12xf32, #tpu.memory_space<vmem>>, %arg5: memref<1x12xf32, #tpu.memory_space<vmem>>, %arg6: memref<64x12xf32, #tpu.memory_space<vmem>>, %arg7: memref<256x6xf32, #tpu.memory_space<vmem>>, %arg8: memref<128x12xf32, #tpu.memory_space<vmem>>) attributes {dimension_semantics = [#tpu.dimension_semantics<parallel>], iteration_bounds = array<i64: 1>, scalar_prefetch = 0 : i64, scratch_operands = 2 : i64, tpu.core_type = #tpu.core_type<tc>, window_params = [{transform_indices = @transform_0, window_bounds = array<i64: 256, 4>}, {pipeline_mode = #tpu.pipeline_mode<synchronous>, transform_indices = @transform_1, window_bounds = array<i64: 12, 6>}, {pipeline_mode = #tpu.pipeline_mode<synchronous>, transform_indices = @transform_2, window_bounds = array<i64: 1, 6>}, {pipeline_mode = #tpu.pipeline_mode<synchronous>, transform_indices = @transform_3, window_bounds = array<i64: 18, 12>}, {pipeline_mode = #tpu.pipeline_mode<synchronous>, transform_indices = @transform_4, window_bounds = array<i64: 1, 12>}, {transform_indices = @transform_5, window_bounds = array<i64: 64, 12>}]} {
    %c0 = arith.constant 0 : index
    %c0_0 = arith.constant 0 : index
    %0 = vector.load %arg1[%c0, %c0_0] : memref<256x4xf32, #tpu.memory_space<vmem>>, vector<256x4xf32>
    %c0_1 = arith.constant 0 : index
    %c0_2 = arith.constant 0 : index
    %1 = vector.load %arg2[%c0_1, %c0_2] : memref<12x6xf32, #tpu.memory_space<vmem>>, vector<12x6xf32>
    %c0_3 = arith.constant 0 : index
    %c0_4 = arith.constant 0 : index
    %2 = vector.load %arg3[%c0_3, %c0_4] : memref<1x6xf32, #tpu.memory_space<vmem>>, vector<1x6xf32>
    %3 = tpu.iota {dimensions = array<i32: 0>} : vector<256x1xi32>
    %c16_i32 = arith.constant 16 : i32
    %c0_i32 = arith.constant 0 : i32
    %4 = arith.cmpi eq, %c16_i32, %c0_i32 : i32
    %c1_i32 = arith.constant 1 : i32
    %5 = arith.select %4, %c1_i32, %c16_i32 : i32
    %6 = vector.broadcast %5 : i32 to vector<256x1xi32>
    %7 = arith.remsi %3, %6 : vector<256x1xi32>
    %c0_i32_5 = arith.constant 0 : i32
    %8 = vector.broadcast %c0_i32_5 : i32 to vector<256x1xi32>
    %9 = arith.cmpi ne, %7, %8 : vector<256x1xi32>
    %c0_i32_6 = arith.constant 0 : i32
    %10 = vector.broadcast %c0_i32_6 : i32 to vector<256x1xi32>
    %11 = arith.cmpi slt, %7, %10 : vector<256x1xi32>
    %c0_i32_7 = arith.constant 0 : i32
    %12 = arith.cmpi slt, %5, %c0_i32_7 : i32
    %13 = vector.broadcast %12 : i1 to vector<256x1xi1>
    %14 = vector.broadcast %13 : vector<256x1xi1> to vector<256x1xi1>
    %15 = arith.xori %11, %14 : vector<256x1xi1>
    %16 = arith.andi %15, %9 : vector<256x1xi1>
    %17 = vector.broadcast %5 : i32 to vector<256x1xi32>
    %18 = arith.addi %7, %17 : vector<256x1xi32>
    %19 = arith.select %16, %18, %7 : vector<256x1xi1>, vector<256x1xi32>
    %cst = arith.constant 0.000000e+00 : f32
    %20 = vector.broadcast %cst : f32 to vector<1x4xf32>
    %c0_i32_8 = arith.constant 0 : i32
    %21 = vector.broadcast %c0_i32_8 : i32 to vector<256x1xi32>
    %22 = arith.cmpi sgt, %19, %21 : vector<256x1xi32>
    %23 = vector.extract_strided_slice %0 {offsets = [0, 0], sizes = [255, 4], strides = [1, 1]} : vector<256x4xf32> to vector<255x4xf32>
    %24 = tpu.concatenate %20, %23 in 0 : vector<1x4xf32>, vector<255x4xf32> -> vector<256x4xf32>
    %cst_9 = arith.constant 0.000000e+00 : f32
    %25 = vector.shape_cast %22 : vector<256x1xi1> to vector<256x1xi1>
    %26 = vector.broadcast %25 : vector<256x1xi1> to vector<256x4xi1>
    %27 = vector.broadcast %cst_9 : f32 to vector<256x4xf32>
    %28 = arith.select %26, %24, %27 : vector<256x4xi1>, vector<256x4xf32>
    %c15_i32 = arith.constant 15 : i32
    %29 = vector.broadcast %c15_i32 : i32 to vector<256x1xi32>
    %30 = arith.cmpi slt, %19, %29 : vector<256x1xi32>
    %31 = vector.extract_strided_slice %0 {offsets = [1, 0], sizes = [255, 4], strides = [1, 1]} : vector<256x4xf32> to vector<255x4xf32>
    %32 = tpu.concatenate %31, %20 in 0 : vector<255x4xf32>, vector<1x4xf32> -> vector<256x4xf32>
    %cst_10 = arith.constant 0.000000e+00 : f32
    %33 = vector.shape_cast %30 : vector<256x1xi1> to vector<256x1xi1>
    %34 = vector.broadcast %33 : vector<256x1xi1> to vector<256x4xi1>
    %35 = vector.broadcast %cst_10 : f32 to vector<256x4xf32>
    %36 = arith.select %34, %32, %35 : vector<256x4xi1>, vector<256x4xf32>
    %37 = tpu.concatenate %28, %0, %36 in 1 : vector<256x4xf32>, vector<256x4xf32>, vector<256x4xf32> -> vector<256x12xf32>
    %cst_11 = arith.constant dense<0.000000e+00> : vector<256x6xf32>
    %38 = tpu.matmul %37, %1, %cst_11 {dimension_numbers = #tpu.dot_dimension_numbers<[1], [0], [0], [1], [0, 0, 1, 1], [], []>} : vector<256x12xf32>, vector<12x6xf32>, vector<256x6xf32> -> vector<256x6xf32>
    %39 = vector.broadcast %2 : vector<1x6xf32> to vector<256x6xf32>
    %40 = arith.addf %38, %39 : vector<256x6xf32>
    %cst_12 = arith.constant 0.000000e+00 : f32
    %41 = vector.broadcast %cst_12 : f32 to vector<256x6xf32>
    %42 = arith.maximumf %40, %41 : vector<256x6xf32>
    %43 = vector.extract_strided_slice %42 {offsets = [1, 0], sizes = [255, 6], strides = [1, 1]} : vector<256x6xf32> to vector<255x6xf32>
    %44 = vector.extract_strided_slice %42 {offsets = [255, 0], sizes = [1, 6], strides = [1, 1]} : vector<256x6xf32> to vector<1x6xf32>
    %45 = tpu.concatenate %43, %44 in 0 : vector<255x6xf32>, vector<1x6xf32> -> vector<256x6xf32>
    %46 = arith.maximumf %42, %45 : vector<256x6xf32>
    %c0_13 = arith.constant 0 : index
    %c0_14 = arith.constant 0 : index
    %47 = vector.load %arg7[%c0_13, %c0_14] : memref<256x6xf32, #tpu.memory_space<vmem>>, vector<256x6xf32>
    tpu.vector_store %arg7[%c0_13, %c0_14], %46 {strides = array<i32>} : memref<256x6xf32, #tpu.memory_space<vmem>>, vector<256x6xf32>,
    %c0_15 = arith.constant 0 : index
    %c0_16 = arith.constant 0 : index
    %48 = tpu.strided_load %arg7[%c0_15, %c0_16] {strides = array<i32: 2, 1>} : memref<256x6xf32, #tpu.memory_space<vmem>>, vector<128x6xf32>
    %c0_17 = arith.constant 0 : index
    %c0_18 = arith.constant 0 : index
    %49 = vector.load %arg4[%c0_17, %c0_18] : memref<18x12xf32, #tpu.memory_space<vmem>>, vector<18x12xf32>
    %c0_19 = arith.constant 0 : index
    %c0_20 = arith.constant 0 : index
    %50 = vector.load %arg5[%c0_19, %c0_20] : memref<1x12xf32, #tpu.memory_space<vmem>>, vector<1x12xf32>
    %51 = tpu.iota {dimensions = array<i32: 0>} : vector<128x1xi32>
    %c8_i32 = arith.constant 8 : i32
    %c0_i32_21 = arith.constant 0 : i32
    %52 = arith.cmpi eq, %c8_i32, %c0_i32_21 : i32
    %c1_i32_22 = arith.constant 1 : i32
    %53 = arith.select %52, %c1_i32_22, %c8_i32 : i32
    %54 = vector.broadcast %53 : i32 to vector<128x1xi32>
    %55 = arith.remsi %51, %54 : vector<128x1xi32>
    %c0_i32_23 = arith.constant 0 : i32
    %56 = vector.broadcast %c0_i32_23 : i32 to vector<128x1xi32>
    %57 = arith.cmpi ne, %55, %56 : vector<128x1xi32>
    %c0_i32_24 = arith.constant 0 : i32
    %58 = vector.broadcast %c0_i32_24 : i32 to vector<128x1xi32>
    %59 = arith.cmpi slt, %55, %58 : vector<128x1xi32>
    %c0_i32_25 = arith.constant 0 : i32
    %60 = arith.cmpi slt, %53, %c0_i32_25 : i32
    %61 = vector.broadcast %60 : i1 to vector<128x1xi1>
    %62 = vector.broadcast %61 : vector<128x1xi1> to vector<128x1xi1>
    %63 = arith.xori %59, %62 : vector<128x1xi1>
    %64 = arith.andi %63, %57 : vector<128x1xi1>
    %65 = vector.broadcast %53 : i32 to vector<128x1xi32>
    %66 = arith.addi %55, %65 : vector<128x1xi32>
    %67 = arith.select %64, %66, %55 : vector<128x1xi1>, vector<128x1xi32>
    %cst_26 = arith.constant 0.000000e+00 : f32
    %68 = vector.broadcast %cst_26 : f32 to vector<1x6xf32>
    %c0_i32_27 = arith.constant 0 : i32
    %69 = vector.broadcast %c0_i32_27 : i32 to vector<128x1xi32>
    %70 = arith.cmpi sgt, %67, %69 : vector<128x1xi32>
    %71 = vector.extract_strided_slice %48 {offsets = [0, 0], sizes = [127, 6], strides = [1, 1]} : vector<128x6xf32> to vector<127x6xf32>
    %72 = tpu.concatenate %68, %71 in 0 : vector<1x6xf32>, vector<127x6xf32> -> vector<128x6xf32>
    %cst_28 = arith.constant 0.000000e+00 : f32
    %73 = vector.shape_cast %70 : vector<128x1xi1> to vector<128x1xi1>
    %74 = vector.broadcast %73 : vector<128x1xi1> to vector<128x6xi1>
    %75 = vector.broadcast %cst_28 : f32 to vector<128x6xf32>
    %76 = arith.select %74, %72, %75 : vector<128x6xi1>, vector<128x6xf32>
    %c7_i32 = arith.constant 7 : i32
    %77 = vector.broadcast %c7_i32 : i32 to vector<128x1xi32>
    %78 = arith.cmpi slt, %67, %77 : vector<128x1xi32>
    %79 = vector.extract_strided_slice %48 {offsets = [1, 0], sizes = [127, 6], strides = [1, 1]} : vector<128x6xf32> to vector<127x6xf32>
    %80 = tpu.concatenate %79, %68 in 0 : vector<127x6xf32>, vector<1x6xf32> -> vector<128x6xf32>
    %cst_29 = arith.constant 0.000000e+00 : f32
    %81 = vector.shape_cast %78 : vector<128x1xi1> to vector<128x1xi1>
    %82 = vector.broadcast %81 : vector<128x1xi1> to vector<128x6xi1>
    %83 = vector.broadcast %cst_29 : f32 to vector<128x6xf32>
    %84 = arith.select %82, %80, %83 : vector<128x6xi1>, vector<128x6xf32>
    %85 = tpu.concatenate %76, %48, %84 in 1 : vector<128x6xf32>, vector<128x6xf32>, vector<128x6xf32> -> vector<128x18xf32>
    %cst_30 = arith.constant dense<0.000000e+00> : vector<128x12xf32>
    %86 = tpu.matmul %85, %49, %cst_30 {dimension_numbers = #tpu.dot_dimension_numbers<[1], [0], [0], [1], [0, 0, 1, 1], [], []>} : vector<128x18xf32>, vector<18x12xf32>, vector<128x12xf32> -> vector<128x12xf32>
    %87 = vector.broadcast %50 : vector<1x12xf32> to vector<128x12xf32>
    %88 = arith.addf %86, %87 : vector<128x12xf32>
    %cst_31 = arith.constant 0.000000e+00 : f32
    %89 = vector.broadcast %cst_31 : f32 to vector<128x12xf32>
    %90 = arith.maximumf %88, %89 : vector<128x12xf32>
    %91 = vector.extract_strided_slice %90 {offsets = [1, 0], sizes = [127, 12], strides = [1, 1]} : vector<128x12xf32> to vector<127x12xf32>
    %92 = vector.extract_strided_slice %90 {offsets = [127, 0], sizes = [1, 12], strides = [1, 1]} : vector<128x12xf32> to vector<1x12xf32>
    %93 = tpu.concatenate %91, %92 in 0 : vector<127x12xf32>, vector<1x12xf32> -> vector<128x12xf32>
    %94 = arith.maximumf %90, %93 : vector<128x12xf32>
    %c0_32 = arith.constant 0 : index
    %c0_33 = arith.constant 0 : index
    %95 = vector.load %arg8[%c0_32, %c0_33] : memref<128x12xf32, #tpu.memory_space<vmem>>, vector<128x12xf32>
    tpu.vector_store %arg8[%c0_32, %c0_33], %94 {strides = array<i32>} : memref<128x12xf32, #tpu.memory_space<vmem>>, vector<128x12xf32>,
    %c0_34 = arith.constant 0 : index
    %c0_35 = arith.constant 0 : index
    %96 = tpu.strided_load %arg8[%c0_34, %c0_35] {strides = array<i32: 2, 1>} : memref<128x12xf32, #tpu.memory_space<vmem>>, vector<64x12xf32>
    %c0_36 = arith.constant 0 : index
    %c0_37 = arith.constant 0 : index
    %97 = vector.load %arg6[%c0_36, %c0_37] : memref<64x12xf32, #tpu.memory_space<vmem>>, vector<64x12xf32>
    tpu.vector_store %arg6[%c0_36, %c0_37], %96 {strides = array<i32>} : memref<64x12xf32, #tpu.memory_space<vmem>>, vector<64x12xf32>,
    return
  }
  func.func @transform_0(%arg0: i32) -> (i32, i32) {
    %c0_i32 = arith.constant 0 : i32
    %c0_i32_0 = arith.constant 0 : i32
    return %arg0, %c0_i32 : i32, i32
  }
  func.func @transform_1(%arg0: i32) -> (i32, i32) {
    %c0_i32 = arith.constant 0 : i32
    %c0_i32_0 = arith.constant 0 : i32
    %c0_i32_1 = arith.constant 0 : i32
    return %c0_i32, %c0_i32_0 : i32, i32
  }
  func.func @transform_2(%arg0: i32) -> (i32, i32) {
    %c0_i32 = arith.constant 0 : i32
    %c0_i32_0 = arith.constant 0 : i32
    %c0_i32_1 = arith.constant 0 : i32
    return %c0_i32, %c0_i32_0 : i32, i32
  }
  func.func @transform_3(%arg0: i32) -> (i32, i32) {
    %c0_i32 = arith.constant 0 : i32
    %c0_i32_0 = arith.constant 0 : i32
    %c0_i32_1 = arith.constant 0 : i32
    return %c0_i32, %c0_i32_0 : i32, i32
  }
  func.func @transform_4(%arg0: i32) -> (i32, i32) {
    %c0_i32 = arith.constant 0 : i32
    %c0_i32_0 = arith.constant 0 : i32
    %c0_i32_1 = arith.constant 0 : i32
    return %c0_i32, %c0_i32_0 : i32, i32
  }
  func.func @transform_5(%arg0: i32) -> (i32, i32) {
    %c0_i32 = arith.constant 0 : i32
    %c0_i32_0 = arith.constant 0 : i32
    return %arg0, %c0_i32 : i32, i32
  }
}

module attributes {stable_mosaic.version = 11 : i64} {
  func.func @_lstm_chunk_kernel(%arg0: i32, %arg1: memref<8x2x53xf32, #tpu.memory_space<vmem>>, %arg2: memref<2x1xi32, #tpu.memory_space<vmem>>, %arg3: memref<53x128xf32, #tpu.memory_space<vmem>>, %arg4: memref<32x128xf32, #tpu.memory_space<vmem>>, %arg5: memref<1x128xf32, #tpu.memory_space<vmem>>, %arg6: memref<8x2x32xf32, #tpu.memory_space<vmem>>, %arg7: memref<2x32xf32, #tpu.memory_space<vmem>>, %arg8: memref<2x32xf32, #tpu.memory_space<vmem>>) attributes {dimension_semantics = [#tpu.dimension_semantics<arbitrary>], iteration_bounds = array<i64: 1>, scalar_prefetch = 0 : i64, scratch_operands = 2 : i64, tpu.core_type = #tpu.core_type<tc>, window_params = [{transform_indices = @transform_0, window_bounds = array<i64: 8, 2, 53>}, {pipeline_mode = #tpu.pipeline_mode<synchronous>, transform_indices = @transform_1, window_bounds = array<i64: 2, 1>}, {pipeline_mode = #tpu.pipeline_mode<synchronous>, transform_indices = @transform_2, window_bounds = array<i64: 53, 128>}, {pipeline_mode = #tpu.pipeline_mode<synchronous>, transform_indices = @transform_3, window_bounds = array<i64: 32, 128>}, {pipeline_mode = #tpu.pipeline_mode<synchronous>, transform_indices = @transform_4, window_bounds = array<i64: 1, 128>}, {transform_indices = @transform_5, window_bounds = array<i64: 8, 2, 32>}]} {
    %c0_i32 = arith.constant 0 : i32
    %0 = arith.cmpi eq, %arg0, %c0_i32 : i32
    %1 = arith.extui %0 : i1 to i32
    %c0_i32_0 = arith.constant 0 : i32
    %2 = arith.cmpi ne, %1, %c0_i32_0 : i32
    scf.if %2 {
      %cst = arith.constant 0.000000e+00 : f32
      %8 = vector.broadcast %cst : f32 to vector<2x32xf32>
      %c0_10 = arith.constant 0 : index
      %c0_11 = arith.constant 0 : index
      %9 = vector.load %arg7[%c0_10, %c0_11] : memref<2x32xf32, #tpu.memory_space<vmem>>, vector<2x32xf32>
      tpu.vector_store %arg7[%c0_10, %c0_11], %8 {strides = array<i32>} : memref<2x32xf32, #tpu.memory_space<vmem>>, vector<2x32xf32>,
      %cst_12 = arith.constant 0.000000e+00 : f32
      %10 = vector.broadcast %cst_12 : f32 to vector<2x32xf32>
      %c0_13 = arith.constant 0 : index
      %c0_14 = arith.constant 0 : index
      %11 = vector.load %arg8[%c0_13, %c0_14] : memref<2x32xf32, #tpu.memory_space<vmem>>, vector<2x32xf32>
      tpu.vector_store %arg8[%c0_13, %c0_14], %10 {strides = array<i32>} : memref<2x32xf32, #tpu.memory_space<vmem>>, vector<2x32xf32>,
    } else {
    }
    %c0 = arith.constant 0 : index
    %c0_1 = arith.constant 0 : index
    %3 = vector.load %arg2[%c0, %c0_1] : memref<2x1xi32, #tpu.memory_space<vmem>>, vector<2x1xi32>
    %c0_2 = arith.constant 0 : index
    %c0_3 = arith.constant 0 : index
    %4 = vector.load %arg3[%c0_2, %c0_3] : memref<53x128xf32, #tpu.memory_space<vmem>>, vector<53x128xf32>
    %c0_4 = arith.constant 0 : index
    %c0_5 = arith.constant 0 : index
    %5 = vector.load %arg4[%c0_4, %c0_5] : memref<32x128xf32, #tpu.memory_space<vmem>>, vector<32x128xf32>
    %c0_6 = arith.constant 0 : index
    %c0_7 = arith.constant 0 : index
    %6 = vector.load %arg5[%c0_6, %c0_7] : memref<1x128xf32, #tpu.memory_space<vmem>>, vector<1x128xf32>
    %c0_i32_8 = arith.constant 0 : i32
    %c8_i32 = arith.constant 8 : i32
    %7 = arith.addi %c0_i32_8, %c8_i32 : i32
    %c1_i32 = arith.constant 1 : i32
    scf.for %arg9 = %c0_i32_8 to %7 step %c1_i32  : i32 {
      %c8_i32_10 = arith.constant 8 : i32
      %8 = arith.muli %arg0, %c8_i32_10 : i32
      %9 = arith.addi %8, %arg9 : i32
      %10 = arith.index_cast %arg9 : i32 to index
      %c0_11 = arith.constant 0 : index
      %c0_12 = arith.constant 0 : index
      %11 = vector.load %arg1[%10, %c0_11, %c0_12] : memref<8x2x53xf32, #tpu.memory_space<vmem>>, vector<1x2x53xf32>
      %12 = vector.shape_cast %11 : vector<1x2x53xf32> to vector<2x53xf32>
      %c0_13 = arith.constant 0 : index
      %c0_14 = arith.constant 0 : index
      %13 = vector.load %arg7[%c0_13, %c0_14] : memref<2x32xf32, #tpu.memory_space<vmem>>, vector<2x32xf32>
      %c0_15 = arith.constant 0 : index
      %c0_16 = arith.constant 0 : index
      %14 = vector.load %arg8[%c0_15, %c0_16] : memref<2x32xf32, #tpu.memory_space<vmem>>, vector<2x32xf32>
      %cst = arith.constant dense<0.000000e+00> : vector<2x128xf32>
      %15 = tpu.matmul %12, %4, %cst {dimension_numbers = #tpu.dot_dimension_numbers<[1], [0], [0], [1], [0, 0, 1, 1], [], []>} : vector<2x53xf32>, vector<53x128xf32>, vector<2x128xf32> -> vector<2x128xf32>
      %cst_17 = arith.constant dense<0.000000e+00> : vector<2x128xf32>
      %16 = tpu.matmul %13, %5, %cst_17 {dimension_numbers = #tpu.dot_dimension_numbers<[1], [0], [0], [1], [0, 0, 1, 1], [], []>} : vector<2x32xf32>, vector<32x128xf32>, vector<2x128xf32> -> vector<2x128xf32>
      %17 = arith.addf %15, %16 : vector<2x128xf32>
      %18 = vector.broadcast %6 : vector<1x128xf32> to vector<2x128xf32>
      %19 = arith.addf %17, %18 : vector<2x128xf32>
      %20 = vector.extract_strided_slice %19 {offsets = [0, 0], sizes = [2, 96], strides = [1, 1]} : vector<2x128xf32> to vector<2x96xf32>
      %21 = arith.negf %20 : vector<2x96xf32>
      %22 = math.exp %21 : vector<2x96xf32>
      %cst_18 = arith.constant 1.000000e+00 : f32
      %23 = vector.broadcast %cst_18 : f32 to vector<2x96xf32>
      %24 = arith.addf %23, %22 : vector<2x96xf32>
      %25 = arith.divf %23, %24 : vector<2x96xf32>
      %26 = vector.extract_strided_slice %25 {offsets = [0, 0], sizes = [2, 32], strides = [1, 1]} : vector<2x96xf32> to vector<2x32xf32>
      %27 = vector.extract_strided_slice %25 {offsets = [0, 32], sizes = [2, 32], strides = [1, 1]} : vector<2x96xf32> to vector<2x32xf32>
      %28 = vector.extract_strided_slice %25 {offsets = [0, 64], sizes = [2, 32], strides = [1, 1]} : vector<2x96xf32> to vector<2x32xf32>
      %29 = vector.extract_strided_slice %19 {offsets = [0, 96], sizes = [2, 32], strides = [1, 1]} : vector<2x128xf32> to vector<2x32xf32>
      %30 = math.tanh %29 : vector<2x32xf32>
      %31 = arith.mulf %27, %14 : vector<2x32xf32>
      %32 = arith.mulf %26, %30 : vector<2x32xf32>
      %33 = arith.addf %31, %32 : vector<2x32xf32>
      %34 = math.tanh %33 : vector<2x32xf32>
      %35 = arith.mulf %28, %34 : vector<2x32xf32>
      %36 = vector.broadcast %9 : i32 to vector<2x1xi32>
      %37 = arith.cmpi slt, %36, %3 : vector<2x1xi32>
      %38 = vector.shape_cast %37 : vector<2x1xi1> to vector<2x1xi1>
      %39 = vector.broadcast %38 : vector<2x1xi1> to vector<2x32xi1>
      %40 = arith.select %39, %35, %13 : vector<2x32xi1>, vector<2x32xf32>
      %c0_19 = arith.constant 0 : index
      %c0_20 = arith.constant 0 : index
      %41 = vector.load %arg7[%c0_19, %c0_20] : memref<2x32xf32, #tpu.memory_space<vmem>>, vector<2x32xf32>
      tpu.vector_store %arg7[%c0_19, %c0_20], %40 {strides = array<i32>} : memref<2x32xf32, #tpu.memory_space<vmem>>, vector<2x32xf32>,
      %42 = vector.shape_cast %37 : vector<2x1xi1> to vector<2x1xi1>
      %43 = vector.broadcast %42 : vector<2x1xi1> to vector<2x32xi1>
      %44 = arith.select %43, %33, %14 : vector<2x32xi1>, vector<2x32xf32>
      %c0_21 = arith.constant 0 : index
      %c0_22 = arith.constant 0 : index
      %45 = vector.load %arg8[%c0_21, %c0_22] : memref<2x32xf32, #tpu.memory_space<vmem>>, vector<2x32xf32>
      tpu.vector_store %arg8[%c0_21, %c0_22], %44 {strides = array<i32>} : memref<2x32xf32, #tpu.memory_space<vmem>>, vector<2x32xf32>,
      %cst_23 = arith.constant 0.000000e+00 : f32
      %46 = vector.shape_cast %37 : vector<2x1xi1> to vector<2x1xi1>
      %47 = vector.broadcast %46 : vector<2x1xi1> to vector<2x32xi1>
      %48 = vector.broadcast %cst_23 : f32 to vector<2x32xf32>
      %49 = arith.select %47, %35, %48 : vector<2x32xi1>, vector<2x32xf32>
      %50 = arith.index_cast %arg9 : i32 to index
      %c0_24 = arith.constant 0 : index
      %c0_25 = arith.constant 0 : index
      %51 = vector.load %arg6[%50, %c0_24, %c0_25] : memref<8x2x32xf32, #tpu.memory_space<vmem>>, vector<1x2x32xf32>
      %52 = vector.shape_cast %51 : vector<1x2x32xf32> to vector<2x32xf32>
      %53 = vector.shape_cast %49 : vector<2x32xf32> to vector<1x2x32xf32>
      tpu.vector_store %arg6[%50, %c0_24, %c0_25], %53 {strides = array<i32>} : memref<8x2x32xf32, #tpu.memory_space<vmem>>, vector<1x2x32xf32>,
    }
    %c8_i32_9 = arith.constant 8 : i32
    return
  }
  func.func @transform_0(%arg0: i32) -> (i32, i32, i32) {
    %c0_i32 = arith.constant 0 : i32
    %c0_i32_0 = arith.constant 0 : i32
    %c0_i32_1 = arith.constant 0 : i32
    return %arg0, %c0_i32, %c0_i32_0 : i32, i32, i32
  }
  func.func @transform_1(%arg0: i32) -> (i32, i32) {
    %c0_i32 = arith.constant 0 : i32
    %c0_i32_0 = arith.constant 0 : i32
    %c0_i32_1 = arith.constant 0 : i32
    return %c0_i32, %c0_i32_0 : i32, i32
  }
  func.func @transform_2(%arg0: i32) -> (i32, i32) {
    %c0_i32 = arith.constant 0 : i32
    %c0_i32_0 = arith.constant 0 : i32
    %c0_i32_1 = arith.constant 0 : i32
    return %c0_i32, %c0_i32_0 : i32, i32
  }
  func.func @transform_3(%arg0: i32) -> (i32, i32) {
    %c0_i32 = arith.constant 0 : i32
    %c0_i32_0 = arith.constant 0 : i32
    %c0_i32_1 = arith.constant 0 : i32
    return %c0_i32, %c0_i32_0 : i32, i32
  }
  func.func @transform_4(%arg0: i32) -> (i32, i32) {
    %c0_i32 = arith.constant 0 : i32
    %c0_i32_0 = arith.constant 0 : i32
    %c0_i32_1 = arith.constant 0 : i32
    return %c0_i32, %c0_i32_0 : i32, i32
  }
  func.func @transform_5(%arg0: i32) -> (i32, i32, i32) {
    %c0_i32 = arith.constant 0 : i32
    %c0_i32_0 = arith.constant 0 : i32
    %c0_i32_1 = arith.constant 0 : i32
    return %arg0, %c0_i32, %c0_i32_0 : i32, i32, i32
  }
}

module attributes {stable_mosaic.version = 11 : i64} {
  func.func @_linear_logsoftmax_kernel(%arg0: i32, %arg1: memref<16x32xf32, #tpu.memory_space<vmem>>, %arg2: memref<32x7xf32, #tpu.memory_space<vmem>>, %arg3: memref<1x7xf32, #tpu.memory_space<vmem>>, %arg4: memref<16x7xf32, #tpu.memory_space<vmem>>) attributes {dimension_semantics = [#tpu.dimension_semantics<parallel>], iteration_bounds = array<i64: 1>, scalar_prefetch = 0 : i64, scratch_operands = 0 : i64, tpu.core_type = #tpu.core_type<tc>, window_params = [{transform_indices = @transform_0, window_bounds = array<i64: 16, 32>}, {pipeline_mode = #tpu.pipeline_mode<synchronous>, transform_indices = @transform_1, window_bounds = array<i64: 32, 7>}, {pipeline_mode = #tpu.pipeline_mode<synchronous>, transform_indices = @transform_2, window_bounds = array<i64: 1, 7>}, {transform_indices = @transform_3, window_bounds = array<i64: 16, 7>}]} {
    %c0 = arith.constant 0 : index
    %c0_0 = arith.constant 0 : index
    %0 = vector.load %arg1[%c0, %c0_0] : memref<16x32xf32, #tpu.memory_space<vmem>>, vector<16x32xf32>
    %c0_1 = arith.constant 0 : index
    %c0_2 = arith.constant 0 : index
    %1 = vector.load %arg2[%c0_1, %c0_2] : memref<32x7xf32, #tpu.memory_space<vmem>>, vector<32x7xf32>
    %cst = arith.constant dense<0.000000e+00> : vector<16x7xf32>
    %2 = tpu.matmul %0, %1, %cst {dimension_numbers = #tpu.dot_dimension_numbers<[1], [0], [0], [1], [0, 0, 1, 1], [], []>} : vector<16x32xf32>, vector<32x7xf32>, vector<16x7xf32> -> vector<16x7xf32>
    %c0_3 = arith.constant 0 : index
    %c0_4 = arith.constant 0 : index
    %3 = vector.load %arg3[%c0_3, %c0_4] : memref<1x7xf32, #tpu.memory_space<vmem>>, vector<1x7xf32>
    %4 = vector.broadcast %3 : vector<1x7xf32> to vector<16x7xf32>
    %5 = arith.addf %2, %4 : vector<16x7xf32>
    %cst_5 = arith.constant dense<0xFF800000> : vector<16xf32>
    %6 = vector.multi_reduction <maximumf>, %5, %cst_5 [1] : vector<16x7xf32> to vector<16xf32>
    %7 = vector.shape_cast %6 : vector<16xf32> to vector<16x1xf32>
    %8 = vector.broadcast %7 : vector<16x1xf32> to vector<16x7xf32>
    %9 = arith.subf %5, %8 : vector<16x7xf32>
    %10 = math.exp %9 : vector<16x7xf32>
    %cst_6 = arith.constant dense<0.000000e+00> : vector<16xf32>
    %11 = vector.multi_reduction <add>, %10, %cst_6 [1] : vector<16x7xf32> to vector<16xf32>
    %12 = vector.shape_cast %11 : vector<16xf32> to vector<16x1xf32>
    %13 = math.log %12 : vector<16x1xf32>
    %14 = vector.broadcast %13 : vector<16x1xf32> to vector<16x7xf32>
    %15 = arith.subf %9, %14 : vector<16x7xf32>
    %c0_7 = arith.constant 0 : index
    %c0_8 = arith.constant 0 : index
    %16 = vector.load %arg4[%c0_7, %c0_8] : memref<16x7xf32, #tpu.memory_space<vmem>>, vector<16x7xf32>
    tpu.vector_store %arg4[%c0_7, %c0_8], %15 {strides = array<i32>} : memref<16x7xf32, #tpu.memory_space<vmem>>, vector<16x7xf32>,
    return
  }
  func.func @transform_0(%arg0: i32) -> (i32, i32) {
    %c0_i32 = arith.constant 0 : i32
    %c0_i32_0 = arith.constant 0 : i32
    return %arg0, %c0_i32 : i32, i32
  }
  func.func @transform_1(%arg0: i32) -> (i32, i32) {
    %c0_i32 = arith.constant 0 : i32
    %c0_i32_0 = arith.constant 0 : i32
    %c0_i32_1 = arith.constant 0 : i32
    return %c0_i32, %c0_i32_0 : i32, i32
  }
  func.func @transform_2(%arg0: i32) -> (i32, i32) {
    %c0_i32 = arith.constant 0 : i32
    %c0_i32_0 = arith.constant 0 : i32
    %c0_i32_1 = arith.constant 0 : i32
    return %c0_i32, %c0_i32_0 : i32, i32
  }
  func.func @transform_3(%arg0: i32) -> (i32, i32) {
    %c0_i32 = arith.constant 0 : i32
    %c0_i32_0 = arith.constant 0 : i32
    return %arg0, %c0_i32 : i32, i32
  }
}

</mosaic_0001>

<bundles_post_ra>
// kernel: net_forward.5
= control target key start
LH: loop header
LB: loop body
LE: loop exit
PB: predicated region body
PF: predicated region fallthrough
CT: control target
= control target key end

     0   :  { %vm27_vm0 = vcmask 261120   ;;  %vm109_vm1 = vcmask 56320   ;;  %s229_s1 = inlined_call_operand.vmem [shape: f32[32,7], index: 1, kind: input, shape index: {}]   ;;  %s230_s0 = inlined_call_operand.vmem [shape: f32[16,32], index: 0, kind: input, shape index: {}]   ;;  %s231_s2 = inlined_call_operand.vmem [shape: f32[1,7], index: 2, kind: input, shape index: {}]   ;;  %s232_s3 = inlined_call_operand.vmem [shape: f32[16,7], index: 3, kind: output, shape index: {}]  }
   0x1   :  { %v16_v0 = vld [vmem:[%s229_s1] sm:$0xff]  ;;  %v17_v1 = vld [vmem:[%s229_s1 + $0x8] sm:$0xff]  ;;  %v18_v2 = vld [vmem:[%s229_s1 + $0x10] sm:$0xff] }
   0x2   :  { %v160_v3 = vpack.c.bf16 %v17_v1, %v16_v0  ;;  %v19_v4 = vld [vmem:[%s229_s1 + $0x18] sm:$0xff]  ;;  %v14_v5 = vld [vmem:[%s230_s0] sm:$0xff]  ;;  %v15_v7 = vld [vmem:[%s230_s0 + $0x8] sm:$0xff] }
   0x3   :  { %v164_v6 = vpack.c.bf16 %v19_v4, %v18_v2  ;;  %157 = vmatprep.mubr.msk.f32.mxu0 %vm27_vm0, %v14_v5  ;;  %v140_v8 = vld [vmem:[%s231_s2] ss:$0 sm:$0xff] }
   0x4   :  { %161 = vmatprep.subr.bf16.mxu0 %v160_v3 }
   0x5   :  { %163 = vmatpush3.bf16.msra.mxu0 %v160_v3 }
   0x6   :  { %165 = vmatprep.subr.bf16.mxu0 %v164_v6 }
   0x9   :  { %167 = vmatpush3.bf16.msra.mxu0 %v164_v6 }
   0xc   :  { %158 = vmatmul.mubr.msk.f32.vlgmr.msra.gmra.mrb[0].mxu0 %vm27_vm0, %v15_v7 }
  0xdf   :  { %v159_v9 = vpop.f32.mrb[0].mxu0 }
  0xe0   :  { %v100_v10 = vpop.f32.mrb[1].mxu0  ;;  %v106_v12 = vadd.f32 %v159_v9, %v140_v8 }
  0xe1   :  { %v101_v11 = vadd.f32 %v140_v8, %v100_v10 }
  0xe2   :  { %v113_v14 = vsel %vm109_vm1, %v106_v12, -inf }
  0xe3   :  { %v110_v13 = vsel %vm109_vm1, %v101_v11, -inf }
  0xe4   :  { %111 = vmax.xlane.f32.xlu0 %v110_v13 }
  0xe8   :  { %114 = vmax.xlane.f32.xlu0 %v113_v14 }
 0x171   :  { %v112_v15 = vpop.xlane.xlu0 %111 }
 0x172   :  { %v116_v16 = vsub.f32 %v101_v11, %v112_v15 }
 0x174   :  { %v118_v17 = vmul.f32 1.442695, %v116_v16 }
 0x175   :  { %v115_v18 = vpop.xlane.xlu0 %114 }
 0x176   :  { %168 = vpow2.f32 %v118_v17  ;;  %v117_v19 = vsub.f32 %v106_v12, %v115_v18 }
 0x178   :  { %v120_v20 = vmul.f32 1.442695, %v117_v19 }
 0x17a   :  { %170 = vpow2.f32 %v120_v20 }
 0x180   :  { %v169_v21 = vpop.eup %168 }
 0x181   :  { %v122_v22 = vsel %vm109_vm1, %v169_v21, 0.0 }
 0x182   :  { %123 = vadd.xlane.f32.xlu1 %v122_v22 }
 0x184   :  { %v171_v23 = vpop.eup %170 }
 0x185   :  { %v125_v24 = vsel %vm109_vm1, %v171_v23, 0.0 }
 0x186   :  { %126 = vadd.xlane.f32.xlu1 %v125_v24 }
 0x20f   :  { %v124_v25 = vpop.xlane.xlu1 %123 }
 0x210   :  { %172 = vlog2.f32 %v124_v25 }
 0x213   :  { %v127_v26 = vpop.xlane.xlu1 %126 }
 0x214   :  { %174 = vlog2.f32 %v127_v26 }
 0x21a   :  { %v173_v27 = vpop.eup %172 }
 0x21b   :  { %v129_v28 = vmul.f32 0.6931472, %v173_v27 }
 0x21d   :  { %v132_v29 = vsub.f32 %v116_v16, %v129_v28 }
 0x21e   :  { %v175_v30 = vpop.eup %174 }
 0x21f   :  { %134 = vst.msk [vmem:[%s232_s3] sm:$0xff] %vm109_vm1, %v132_v29  ;;  %v131_v31 = vmul.f32 0.6931472, %v175_v30 }
 0x221   :  { %v133_v32 = vsub.f32 %v117_v19, %v131_v31 }
 0x223   :  { %135 = vst.msk [vmem:[%s232_s3 + $0x8] sm:$0xff] %vm109_vm1, %v133_v32 }

// kernel: net_forward.4
= control target key start
LH: loop header
LB: loop body
LE: loop exit
PB: predicated region body
PF: predicated region fallthrough
CT: control target
= control target key end

     0   :  { %vm24_vm0 = vcmask 254976   ;;  %v379_v0 = vmov 0.0   ;;  %s484_s17 = smov 0   ;;  %s520_s0 = inlined_call_operand.vmem [shape: f32[8,2,53], index: 0, kind: input, shape index: {}]   ;;  %s521_s1 = inlined_call_operand.vmem [shape: s32[2,1], index: 1, kind: input, shape index: {}]   ;;  %s522_s2 = inlined_call_operand.vmem [shape: f32[53,128], index: 2, kind: input, shape index: {}]   ;;  %s523_s3 = inlined_call_operand.vmem [shape: f32[32,128], index: 3, kind: input, shape index: {}]   ;;  %s524_s5 = inlined_call_operand.vmem [shape: f32[8,2,32], index: 5, kind: output, shape index: {}]   ;;  %s525_s4 = inlined_call_operand.vmem [shape: f32[1,128], index: 4, kind: input, shape index: {}]  }
   0x1   :  { %25 = vst.msk [vmem:[#allocation2] sm:$0x3] %vm24_vm0, %v379_v0  ;;  %26 = vst.msk [vmem:[#allocation3] sm:$0x3] %vm24_vm0, %v379_v0  ;;  %v422_v1 = vld [vmem:[%s521_s1] sm:$0x3] }
   0x2   :  { %v427_v2 = vld [vmem:[%s522_s2] sm:$0xff]  ;;  %v432_v3 = vld [vmem:[%s522_s2 + $0x8] sm:$0xff]  ;;  %v437_v4 = vld [vmem:[%s522_s2 + $0x10] sm:$0xff] }
   0x3   :  { %v442_v5 = vld [vmem:[%s522_s2 + $0x18] sm:$0xff]  ;;  %v447_v6 = vld [vmem:[%s522_s2 + $0x20] sm:$0xff]  ;;  %v452_v7 = vld [vmem:[%s522_s2 + $0x28] sm:$0xff] }
   0x4   :  { %v457_v8 = vld [vmem:[%s522_s2 + $0x30] sm:$0x1f]  ;;  %v462_v9 = vld [vmem:[%s523_s3] sm:$0xff]  ;;  %v467_v10 = vld [vmem:[%s523_s3 + $0x8] sm:$0xff] }
   0x5   :  { %v472_v11 = vld [vmem:[%s523_s3 + $0x10] sm:$0xff]  ;;  %v477_v12 = vld [vmem:[%s523_s3 + $0x18] sm:$0xff]  ;;  %v482_v13 = vld [vmem:[%s525_s4] ss:$0 sm:$0xff] }
   0x6 LB: > { %v337_v14 = vpack.c.bf16 %v432_v3, %v427_v2  ;;  %v331_v15 = vpack.c.bf16 %v467_v10, %v462_v9  ;;  %v380_v16 = vmov 0.0|0.0   ;;  %v340_v17 = vpack.c.bf16 %v442_v5, %v437_v4  ;;  %s283_s3 = sshll.u32 %s377_s17, 1  ;;  %s384_s20 = smov 32   ;;  %s377_s17 = sphi %s484_s17, %s45_s17  }
   0x7   : > { %336 = vmatprep.subr.bf16.mxu1 %v380_v16  ;;  %330 = vmatprep.subr.bf16.mxu0 %v380_v16  ;;  %v334_v18 = vpack.c.bf16 %v477_v12, %v472_v11  ;;  %vm381_vm1 = vmmov 0   ;;  %v382_v19 = vmov 0.0   ;;  %v343_v20 = vpack.c.bf16 %v452_v7, %v447_v6  ;;  %s49_s19 = scalar_lea.vmem %s520_s0, %s283_s3  ;;  %s385_s21 = smov 64  }
   0x8   : > { %338 = vmatpush3.bf16.msra.mxu1 %v337_v14  ;;  %332 = vmatpush3.bf16.msra.mxu0 %v331_v15  ;;  %v51_v21 = vld [vmem:[#allocation2] sm:$0x3]  ;;  %vm53_vm2 = vcmask 261120   ;;  %vm131_vm3 = vcmask 1044480   ;;  %vm127_vm4 = vcmask 433152   ;;  %v383_v29 = vmov 0   ;;  %s268_s25 = scalar_lea.vmem %s524_s5, %s283_s3 }
   0x9   : > { %339 = vmatprep.subr.bf16.mxu1 %v380_v16  ;;  %333 = vmatprep.subr.bf16.mxu0 %v380_v16  ;;  %v50_v22 = vld [vmem:[%s49_s19] sm:$0x3]  ;;  %v52_v31 = vld [vmem:[#allocation3] sm:$0x3]  ;;  %v240_v35 = vstv %s377_s17  ;;  %s386_s22 = smov 96   ;;  %s45_s17 = sadd.s32 1, %s377_s17  }
   0xa   : > { %310 = vmatprep.mubr.msk.f32.mxu0 %vm381_vm1, %v382_v19  ;;  %327 = vmatprep.mubr.msk.f32.mxu1 %vm381_vm1, %v382_v19  ;;  %vm241_vm5 = vcmp.lt.s32.totalorder %v240_v35, %v422_v1  ;;  %p42_p0 = scmp.ge.s32.totalorder %s45_s17, 8  }
   0xb   : > { %361 = vset.pattern.permute.xlu1 %v383_v29  ;;  %362 = vset.pattern.permute.xlu0 %v383_v29  ;;  %v242_v39 = vsel %vm241_vm5, 1, %v383_v29 }
   0xc   : > { %341 = vmatpush3.bf16.msra.mxu1 %v340_v17  ;;  %335 = vmatpush3.bf16.msra.mxu0 %v334_v18 }
   0xd   : > { %342 = vmatprep.subr.bf16.mxu1 %v380_v16 }
   0xf   : > { %311 = vmatmul.mubr.msk.f32.vlgmr.msra.gmra.mrb[0].mxu0 %vm53_vm2, %v51_v21 }
  0x10   : > { %344 = vmatpush3.bf16.msra.mxu1 %v343_v20 }
  0x11   : > { %325 = vmatprep.subr.mxu1 %v382_v19 }
  0x14   : > { %326 = vmatpush3.msk.msra.mxu1 %vm131_vm3, %v457_v8 }
  0x15   : > { %328 = vmatmul.mubr.msk.f32.vlgmr.msra.gmra.mrb[0].mxu1 %vm127_vm4, %v50_v22 }
  0xe2   : > { %v123_v23 = vpop.f32.mrb[0].mxu0 }
  0xe3   : > { %v312_v24 = vpop.f32.mrb[1].mxu0 }
  0xe8   : > { %v201_v25 = vpop.f32.mrb[0].mxu1 }
  0xe9   : > { %v202_v26 = vadd.f32 %v201_v25, %v123_v23  ;;  %v329_v27 = vpop.f32.mrb[1].mxu1 }
  0xeb   : > { %v211_v28 = vadd.f32 %v482_v13, %v202_v26 }
  0xed   : > { %363 = vtanh.f32 %v211_v28  ;;  %v288_v32 = vmul.f32 -1.442695, %v211_v28 }
  0xef   : > { %365 = vpow2.f32 %v288_v32 }
  0xf7   : > { %v364_v30 = vpop.eup %363 }
  0xf8   : > { %225 = vrot.lane.b32.xlu0 %v364_v30, %s384_s20 }
  0xf9   : > { %v366_v33 = vpop.eup %365 }
  0xfa   : > { %v215_v34 = vadd.f32 1.0, %v366_v33 }
  0xfc   : > { %220 = vrot.lane.b32.xlu0 %v52_v31, %s384_s20  ;;  %367 = vrcp.f32 %v215_v34 }
 0x106   : > { %v368_v36 = vpop.eup %367 }
 0x16a   : > { %v226_v37 = vpop.permute.xlu0 %225 }
 0x16b   : > { %v228_v38 = vmul.f32 %v368_v36, %v226_v37 }
 0x16d   : > { %230 = vrot.lane.b32.xlu1 %v228_v38, %s384_s20 }
 0x16e   : > { %v221_v40 = vpop.permute.xlu0 %220 }
 0x16f   : > { %v223_v41 = vmul.f32 %v368_v36, %v221_v40 }
 0x171   : > { %244 = vperm.xlu1 %361, %v242_v39  }
 0x175   : > { %247 = vrot.lane.b32.xlu1 %v51_v21, %s385_s21 }
 0x1df   : > { %v231_v42 = vpop.permute.xlu1 %230 }
 0x1e0   : > { %v233_v43 = vadd.f32 %v231_v42, %v223_v41 }
 0x1e2   : > { %369 = vtanh.f32 %v233_v43 }
 0x1ec   : > { %v370_v44 = vpop.eup %369 }
 0x1ed   : > { %236 = vrot.lane.b32.xlu0 %v370_v44, %s384_s20 }
 0x1f0   : > { %v245_v45 = vpop.permute.xlu1 %244 }
 0x1f1   : > { %vm246_vm6 = vcmp.eq.s32.totalorder %v245_v45, 1 }
 0x1f2   : > { %v257_v46 = vsel %vm246_vm6, %v233_v43, %v221_v40 }
 0x1f3   : > { %259 = vrot.lane.b32.xlu1 %v257_v46, %s386_s22 }
 0x1f4   : > { %v248_v48 = vpop.permute.xlu1 %247 }
 0x25f   : > { %v237_v47 = vpop.permute.xlu0 %236 }
 0x260   : > { %v239_v49 = vmul.f32 %v368_v36, %v237_v47 }
 0x262   : > { %v250_v50 = vsel %vm246_vm6, %v239_v49, %v248_v48  ;;  %v263_v52 = vsel %vm246_vm6, %v239_v49, 0.0 }
 0x263   : > { %252 = vrot.lane.b32.xlu0 %v250_v50, %s385_s21 }
 0x265   : > { %v260_v51 = vpop.permute.xlu1 %259 }
 0x266   : > { %262 = vst.msk [vmem:[#allocation3] sm:$0x3] %vm24_vm0, %v260_v51 }
 0x267   : > { %265 = vrot.lane.b32.xlu0 %v263_v52, %s385_s21 }
 0x2d4   :  { %44 = sbr.rel (!%p42_p0) target bundleno = 6 (0x6), region = 53 }
 0x2d5   : > { %v253_v53 = vpop.permute.xlu0 %252 }
 0x2d6   : > { %256 = vst.msk [vmem:[#allocation2] sm:$0x3] %vm24_vm0, %v253_v53 }
 0x2d9   : > { %v266_v54 = vpop.permute.xlu0 %265 }
 0x2da   : > { %269 = vst.msk [vmem:[%s268_s25] sm:$0x3] %vm24_vm0, %v266_v54 }

// kernel: net_forward.3
= control target key start
LH: loop header
LB: loop body
LE: loop exit
PB: predicated region body
PF: predicated region fallthrough
CT: control target
= control target key end

     0   :  { %v55_v0 = vlaneseq  ;;  %s2959_s24 = smov 4   ;;  %vm761_vm0 = vcmask 1046528   ;;  %s2960_s29 = smov 8   ;;  %vm536_vm5 = vcmask 1040384   ;;  %vm1347_vm6 = vcmask 1043456   ;;  %s4297_s0 = inlined_call_operand.vmem [shape: f32[256,4], index: 0, kind: input, shape index: {}]   ;;  %s4298_s1 = inlined_call_operand.vmem [shape: f32[12,6], index: 1, kind: input, shape index: {}]   ;;  %s4299_s2 = inlined_call_operand.vmem [shape: f32[1,6], index: 2, kind: input, shape index: {}]   ;;  %s4300_s3 = inlined_call_operand.vmem [shape: f32[18,12], index: 3, kind: input, shape index: {}]   ;;  %s4301_s4 = inlined_call_operand.vmem [shape: f32[1,12], index: 4, kind: input, shape index: {}]   ;;  %s4302_s5 = inlined_call_operand.vmem [shape: f32[64,12], index: 5, kind: output, shape index: {}]  }
   0x1   :  { %v2997_v1 = vld [vmem:[%s4297_s0 + $0x18] sm:$0xff]  ;;  %v3002_v2 = vld [vmem:[%s4297_s0] sm:$0xff]  ;;  %v3007_v3 = vld [vmem:[%s4297_s0 + $0x8] sm:$0xff]  ;;  %vm2961_vm8 = vmmov 1  }
   0x2   :  { %960 = vrot.lane.b32.xlu1 %v2997_v1, %s2959_s24  ;;  %954 = vrot.lane.b32.xlu0 %v3002_v2, %s2959_s24  ;;  %v762_v4 = vrot.slane %v3002_v2, 1  ;;  %v3017_v5 = vld [vmem:[%s4297_s0 + $0x10] sm:$0xff]  ;;  %v763_v6 = vrot.slane %v3007_v3, 1  ;;  %v3023_v7 = vld [vmem:[%s4297_s0 + $0x20] sm:$0xff]  ;;  %v3026_v9 = vshrl.u32 %v55_v0, 7  ;;  %v767_v11 = vrot.slane %v2997_v1, 1  ;;  %vm3157_vm9 = vmpackc.low %vm1347_vm6, %vm2961_vm8 }
   0x3   :  { %v765_v8 = vrot.slane %v3017_v5, 1  ;;  %v769_v14 = vrot.slane %v3023_v7, 1  ;;  %v3053_v22 = vld [vmem:[%s4297_s0 + $0x28] sm:$0xff]  ;;  %v3058_v23 = vld [vmem:[%s4297_s0 + $0x30] sm:$0xff]  ;;  %v3076_v31 = vld [vmem:[%s4297_s0 + $0x38] sm:$0xff]  ;;  %v542_v43 = vrot.slane %v2997_v1, 7 }
   0x4   :  { %v764_v10 = vsel %vm761_vm0, %v762_v4, %v763_v6  ;;  %v3034_v12 = vadd.s32 8, %v3026_v9  ;;  %v3037_v13 = vadd.s32 24, %v3026_v9  ;;  %v3047_v19 = vadd.s32 40, %v3026_v9  ;;  %v3081_v32 = vld [vmem:[%s4297_s0 + $0x40] sm:$0xff]  ;;  %v3104_v41 = vld [vmem:[%s4297_s0 + $0x48] sm:$0xff]  ;;  %v3109_v42 = vld [vmem:[%s4297_s0 + $0x50] sm:$0xff] }
   0x5   :  { %v766_v16 = vsel %vm761_vm0, %v763_v6, %v765_v8  ;;  %v770_v18 = vsel %vm761_vm0, %v767_v11, %v769_v14  ;;  %v768_v21 = vsel %vm761_vm0, %v765_v8, %v767_v11  ;;  %v771_v25 = vrot.slane %v3053_v22, 1  ;;  %v52_v55 = vld [vmem:[%s4298_s1] sm:$0xff]  ;;  %v53_v56 = vld [vmem:[%s4298_s1 + $0x8] sm:$0xf]  ;;  %v31_v58 = vld [vmem:[%s4297_s0 + $0x58] sm:$0xff] }
   0x6   :  { %956 = vrot.lane.b32.xlu0 %v3007_v3, %s2959_s24  ;;  %1082 = vrot.lane.b32.xlu1 %v764_v10, %s2960_s29  ;;  %v99_v15 = vand.u32 15, %v3034_v12  ;;  %v113_v17 = vand.u32 15, %v3037_v13  ;;  %v127_v26 = vand.u32 15, %v3047_v19  ;;  %v773_v27 = vrot.slane %v3058_v23, 1  ;;  %v32_v59 = vld [vmem:[%s4297_s0 + $0x60] sm:$0xff]  ;;  %v33_v10 = vld [vmem:[%s4297_s0 + $0x68] sm:$0xff] }
   0x7   :  { %v3070_v29 = vadd.s32 56, %v3026_v9  ;;  %v772_v30 = vsel %vm761_vm0, %v769_v14, %v771_v25  ;;  %v775_v34 = vrot.slane %v3076_v31, 1  ;;  %v777_v36 = vrot.slane %v3081_v32, 1  ;;  %v3184_v11 = vld [vmem:[%s4297_s0 + $0x70] sm:$0xff]  ;;  %v36_v52 = vld [vmem:[%s4297_s0 + $0x80] sm:$0xff] }
   0x8   :  { %vm730_vm1 = vcmp.lt.s32.totalorder %v99_v15, 15  ;;  %vm732_vm2 = vcmp.lt.s32.totalorder %v113_v17, 15  ;;  %vm734_vm3 = vcmp.lt.s32.totalorder %v127_v26, 15  ;;  %v774_v28 = vsel %vm761_vm0, %v771_v25, %v773_v27 }
   0x9   :  { %v923_v20 = vsel %vm730_vm1, %v766_v16, 0.0  ;;  %v925_v24 = vsel %vm732_vm2, %v770_v18, 0.0  ;;  %v927_v33 = vsel %vm734_vm3, %v774_v28, 0.0  ;;  %v141_v35 = vand.u32 15, %v3070_v29 }
   0xa   :  { %958 = vrot.lane.b32.xlu0 %v3017_v5, %s2959_s24  ;;  %1084 = vrot.lane.b32.xlu1 %v923_v20, %s2960_s29  ;;  %v778_v38 = vsel %vm761_vm0, %v775_v34, %v777_v36  ;;  %v3098_v39 = vadd.s32 72, %v3026_v9  ;;  %v776_v40 = vsel %vm761_vm0, %v773_v27, %v775_v34  ;;  %v540_v44 = vrot.slane %v3017_v5, 7 }
   0xb   :  { %vm3092_vm4 = vcmp.lt.s32.totalorder %v141_v35, 15  ;;  %v779_v46 = vrot.slane %v3104_v41, 1  ;;  %v781_v48 = vrot.slane %v3109_v42, 1  ;;  %v538_v49 = vrot.slane %v3007_v3, 7 }
   0xc   :  { %v929_v45 = vsel %vm3092_vm4, %v778_v38, 0.0  ;;  %v155_v47 = vand.u32 15, %v3098_v39  ;;  %v3124_v50 = vsel %vm536_vm5, %v540_v44, %v542_v43  ;;  %v537_v51 = vrot.slane %v3002_v2, 7  ;;  %v3457_v2 = vld [vmem:[%s4297_s0 + $0xf8] sm:$0xff] }
   0xd   :  { %v782_v53 = vsel %vm761_vm0, %v779_v46, %v781_v48  ;;  %v3135_v54 = vadd.s32 88, %v3026_v9  ;;  %v780_v57 = vsel %vm761_vm0, %v777_v36, %v779_v46  ;;  %v2942_v63 = vpack.c.bf16 %v53_v56, %v52_v55 }
   0xe   :  { %1086 = vrot.lane.b32.xlu0 %v768_v21, %s2960_s29  ;;  %1088 = vrot.lane.b32.xlu1 %v925_v24, %s2960_s29  ;;  %vm3129_vm7 = vcmp.lt.s32.totalorder %v155_v47, 15  ;;  %v3155_v60 = vsel %vm536_vm5, %v537_v51, %v538_v49  ;;  %v783_v0 = vrot.slane %v31_v58, 1  ;;  %v785_v3 = vrot.slane %v32_v59, 1 }
   0xf   :  { %v931_v62 = vsel %vm3129_vm7, %v782_v53, 0.0  ;;  %v169_v1 = vand.u32 15, %v3135_v54  ;;  %v546_v4 = vrot.slane %v3053_v22, 7  ;;  %2944 = vmatprep.subr.msk.bf16.mxu0 %vm3157_vm9, %v2942_v63  ;;  %v3169_v5 = vsel %vm536_vm5, %v538_v49, %v540_v44  ;;  %2952 = vmatprep.subr.msk.bf16.mxu1 %vm3157_vm9, %v2942_v63 }
  0x10   :  { %2947 = vmatpush3.bf16.msk.msra.mxu0 %vm3157_vm9, %v2942_v63  ;;  %v550_v6 = vrot.slane %v3076_v31, 7  ;;  %v554_v8 = vrot.slane %v3104_v41, 7  ;;  %v3187_v14 = vadd.s32 104, %v3026_v9  ;;  %v544_v15 = vrot.slane %v3023_v7, 7  ;;  %2953 = vmatpush3.bf16.msk.msra.mxu1 %vm3157_vm9, %v2942_v63 }
  0x11   :  { %vm3194_vm10 = vcmp.lt.s32.totalorder %v169_v1, 15  ;;  %v786_v17 = vsel %vm761_vm0, %v783_v0, %v785_v3  ;;  %v548_v18 = vrot.slane %v3058_v23, 7  ;;  %v552_v20 = vrot.slane %v3081_v32, 7 }
  0x12   :  { %962 = vrot.lane.b32.xlu0 %v3023_v7, %s2959_s24  ;;  %964 = vrot.lane.b32.xlu1 %v3053_v22, %s2959_s24  ;;  %v784_v21 = vsel %vm761_vm0, %v781_v48, %v783_v0  ;;  %v3203_v7 = vsel %vm536_vm5, %v542_v43, %v544_v15  ;;  %v3206_v22 = vsel %vm536_vm5, %v544_v15, %v546_v4  ;;  %v787_v24 = vrot.slane %v33_v10, 1  ;;  %v39_v0 = vld [vmem:[%s4297_s0 + $0x98] sm:$0xff] }
  0x13   :  { %v789_v25 = vrot.slane %v3184_v11, 1  ;;  %v558_v26 = vrot.slane %v31_v58, 7  ;;  %v933_v27 = vsel %vm3194_vm10, %v786_v17, 0.0  ;;  %v3216_v28 = vsel %vm536_vm5, %v548_v18, %v550_v6 }
  0x14   :  { %v3227_v34 = vsel %vm536_vm5, %v552_v20, %v554_v8  ;;  %v556_v36 = vrot.slane %v3109_v42, 7  ;;  %v560_v38 = vrot.slane %v32_v59, 7  ;;  %v788_v49 = vsel %vm761_vm0, %v785_v3, %v787_v24 }
  0x15   :  { %v790_v37 = vsel %vm761_vm0, %v787_v24, %v789_v25  ;;  %v568_v56 = vrot.slane %v36_v52, 7  ;;  %v793_v61 = vrot.slane %v36_v52, 1  ;;  %v574_v1 = vrot.slane %v39_v0, 7 }
  0x16   :  { %1090 = vrot.lane.b32.xlu0 %v772_v30, %s2960_s29  ;;  %1092 = vrot.lane.b32.xlu1 %v927_v33, %s2960_s29  ;;  %v562_v30 = vrot.slane %v33_v10, 7  ;;  %v3224_v33 = vsel %vm536_vm5, %v550_v6, %v552_v20  ;;  %v3239_v43 = vsel %vm536_vm5, %v554_v8, %v556_v36  ;;  %v3242_v44 = vsel %vm536_vm5, %v556_v36, %v558_v26 }
  0x17   :  { %v3251_v47 = vsel %vm536_vm5, %v558_v26, %v560_v38  ;;  %v73_v6 = vadd.s32 136, %v3026_v9  ;;  %v75_v26 = vadd.s32 152, %v3026_v9  ;;  %vm1178_vm7 = vcmask 31744  }
  0x18   :  { %v3254_v48 = vsel %vm536_vm5, %v560_v38, %v562_v30  ;;  %vm1211_vm8 = vcmask 64512   ;;  %vm4304_vm9 = vcmask 97280  }
  0x1a   :  { %966 = vrot.lane.b32.xlu0 %v3058_v23, %s2959_s24  ;;  %968 = vrot.lane.b32.xlu1 %v3076_v31, %s2959_s24  ;;  %v3213_v23 = vsel %vm536_vm5, %v546_v4, %v548_v18  ;;  %v183_v31 = vand.u32 15, %v3187_v14  ;;  %v38_v4 = vld [vmem:[%s4297_s0 + $0x90] sm:$0xff]  ;;  %v211_v18 = vand.u32 15, %v73_v6 }
  0x1b   :  { %v797_v20 = vrot.slane %v38_v4, 1 }
  0x1c   :  { %vm3246_vm11 = vcmp.lt.s32.totalorder %v183_v31, 15  ;;  %vm3299_vm13 = vcmp.lt.s32.totalorder %v211_v18, 15 }
  0x1e   :  { %1094 = vrot.lane.b32.xlu0 %v776_v40, %s2960_s29  ;;  %1096 = vrot.lane.b32.xlu1 %v929_v45, %s2960_s29  ;;  %v3233_v40 = vadd.s32 120, %v3026_v9  ;;  %v225_v45 = vand.u32 15, %v75_v26 }
  0x20   :  { %vm748_vm14 = vcmp.lt.s32.totalorder %v225_v45, 15  ;;  %v83_v45 = vadd.s32 216, %v3026_v9 }
  0x22   :  { %970 = vrot.lane.b32.xlu0 %v3081_v32, %s2959_s24  ;;  %972 = vrot.lane.b32.xlu1 %v3104_v41, %s2959_s24  ;;  %v35_v32 = vld [vmem:[%s4297_s0 + $0x78] sm:$0xff]  ;;  %v37_v41 = vld [vmem:[%s4297_s0 + $0x88] sm:$0xff] }
  0x23   :  { %v566_v35 = vrot.slane %v35_v32, 7  ;;  %v570_v46 = vrot.slane %v37_v41, 7  ;;  %v795_v17 = vrot.slane %v37_v41, 1 }
  0x25   :  { %v3275_v63 = vsel %vm536_vm5, %v568_v56, %v570_v46  ;;  %v798_v24 = vsel %vm761_vm0, %v795_v17, %v797_v20 }
  0x26   :  { %1098 = vrot.lane.b32.xlu0 %v780_v57, %s2960_s29  ;;  %1100 = vrot.lane.b32.xlu1 %v931_v62, %s2960_s29  ;;  %v935_v57 = vsel %vm3246_vm11, %v790_v37, 0.0  ;;  %v3272_v62 = vsel %vm536_vm5, %v566_v35, %v568_v56  ;;  %v939_v36 = vsel %vm3299_vm13, %v798_v24, 0.0 }
  0x2a   :  { %974 = vrot.lane.b32.xlu0 %v3109_v42, %s2959_s24  ;;  %976 = vrot.lane.b32.xlu1 %v31_v58, %s2959_s24  ;;  %v564_v42 = vrot.slane %v3184_v11, 7  ;;  %v791_v58 = vrot.slane %v35_v32, 1 }
  0x2c   :  { %v3261_v53 = vsel %vm536_vm5, %v562_v30, %v564_v42  ;;  %v3264_v55 = vsel %vm536_vm5, %v564_v42, %v566_v35  ;;  %v794_v3 = vsel %vm761_vm0, %v791_v58, %v793_v61  ;;  %v792_v8 = vsel %vm761_vm0, %v789_v25, %v791_v58  ;;  %v40_v25 = vld [vmem:[%s4297_s0 + $0xa0] sm:$0xff]  ;;  %v3319_v35 = vld [vmem:[%s4297_s0 + $0xc8] sm:$0xff] }
  0x2d   :  { %v796_v30 = vsel %vm761_vm0, %v793_v61, %v795_v17  ;;  %v586_v37 = vrot.slane %v3319_v35, 7  ;;  %v799_v42 = vrot.slane %v39_v0, 1  ;;  %v77_v61 = vadd.s32 168, %v3026_v9 }
  0x2e   :  { %1102 = vrot.lane.b32.xlu0 %v784_v21, %s2960_s29  ;;  %1104 = vrot.lane.b32.xlu1 %v933_v27, %s2960_s29  ;;  %v3311_v27 = vld [vmem:[%s4297_s0 + $0xa8] sm:$0xff] }
  0x2f   :  { %v578_v31 = vrot.slane %v3311_v27, 7  ;;  %v800_v58 = vsel %vm761_vm0, %v797_v20, %v799_v42  ;;  %v239_v6 = vand.u32 15, %v77_v61  ;;  %v281_v61 = vand.u32 15, %v83_v45 }
  0x30   :  { %v632_v45 = vsel %vm536_vm5, 0.0, %v537_v51 }
  0x31   :  { %vm750_vm15 = vcmp.lt.s32.totalorder %v239_v6, 15  ;;  %vm756_vm3 = vcmp.lt.s32.totalorder %v281_v61, 15  ;;  %v87_v61 = vadd.s32 248, %v3026_v9 }
  0x32   :  { %978 = vrot.lane.b32.xlu0 %v32_v59, %s2959_s24  ;;  %980 = vrot.lane.b32.xlu1 %v33_v10, %s2959_s24  ;;  %v197_v59 = vand.u32 15, %v3233_v40  ;;  %v572_v10 = vrot.slane %v38_v4, 7 }
  0x34   :  { %vm744_vm12 = vcmp.lt.s32.totalorder %v197_v59, 15  ;;  %v3291_v16 = vsel %vm536_vm5, %v570_v46, %v572_v10  ;;  %v801_v46 = vrot.slane %v40_v25, 1 }
  0x35   :  { %v937_v15 = vsel %vm744_vm12, %v794_v3, 0.0  ;;  %v81_v3 = vadd.s32 200, %v3026_v9 }
  0x36   :  { %1106 = vrot.lane.b32.xlu0 %v788_v49, %s2960_s29  ;;  %1108 = vrot.lane.b32.xlu1 %v935_v57, %s2960_s29  ;;  %v802_v57 = vsel %vm761_vm0, %v799_v42, %v801_v46  ;;  %v3396_v42 = vld [vmem:[%s4297_s0 + $0xd8] sm:$0xff] }
  0x37   :  { %v941_v59 = vsel %vm748_vm14, %v802_v57, 0.0  ;;  %v267_v17 = vand.u32 15, %v81_v3  ;;  %v3403_v57 = vld [vmem:[%s4297_s0 + $0xe0] sm:$0xff] }
  0x38   :  { %v817_v3 = vrot.slane %v3403_v57, 1 }
  0x39   :  { %vm754_vm1 = vcmp.lt.s32.totalorder %v267_v17, 15 }
  0x3a   :  { %982 = vrot.lane.b32.xlu0 %v3184_v11, %s2959_s24  ;;  %984 = vrot.lane.b32.xlu1 %v35_v32, %s2959_s24  ;;  %v3294_v11 = vsel %vm536_vm5, %v572_v10, %v574_v1  ;;  %v576_v32 = vrot.slane %v40_v25, 7 }
  0x3c   :  { %v3325_v38 = vsel %vm536_vm5, %v574_v1, %v576_v32  ;;  %v3357_v1 = vld [vmem:[%s4297_s0 + $0xb0] sm:$0xff] }
  0x3e   :  { %1110 = vrot.lane.b32.xlu0 %v792_v8, %s2960_s29  ;;  %1112 = vrot.lane.b32.xlu1 %v937_v15, %s2960_s29  ;;  %v805_v8 = vrot.slane %v3357_v1, 1  ;;  %v811_v15 = vrot.slane %v3319_v35, 1 }
  0x42   :  { %986 = vrot.lane.b32.xlu0 %v36_v52, %s2959_s24  ;;  %988 = vrot.lane.b32.xlu1 %v37_v41, %s2959_s24  ;;  %v3331_v41 = vld [vmem:[%s4297_s0 + $0xc0] sm:$0xff]  ;;  %v3337_v52 = vsel %vm536_vm5, %v576_v32, %v578_v31  ;;  %v3388_v32 = vld [vmem:[%s4297_s0 + $0xb8] sm:$0xff] }
  0x43   :  { %v584_v49 = vrot.slane %v3331_v41, 7  ;;  %v809_v10 = vrot.slane %v3331_v41, 1 }
  0x45   :  { %v3345_v56 = vsel %vm536_vm5, %v584_v49, %v586_v37  ;;  %v812_v24 = vsel %vm761_vm0, %v809_v10, %v811_v15 }
  0x46   :  { %1114 = vrot.lane.b32.xlu0 %v796_v30, %s2960_s29  ;;  %1116 = vrot.lane.b32.xlu1 %v939_v36, %s2960_s29  ;;  %v79_v36 = vadd.s32 184, %v3026_v9 }
  0x4a   :  { %990 = vrot.lane.b32.xlu0 %v38_v4, %s2959_s24  ;;  %992 = vrot.lane.b32.xlu1 %v39_v0, %s2959_s24  ;;  %v803_v4 = vrot.slane %v3311_v27, 1  ;;  %v3365_v0 = vld [vmem:[%s4297_s0 + $0xd0] sm:$0xff] }
  0x4b   :  { %v813_v18 = vrot.slane %v3365_v0, 1 }
  0x4c   :  { %v804_v20 = vsel %vm761_vm0, %v801_v46, %v803_v4  ;;  %v806_v21 = vsel %vm761_vm0, %v803_v4, %v805_v8  ;;  %v807_v46 = vrot.slane %v3388_v32, 1 }
  0x4d   :  { %v943_v26 = vsel %vm750_vm15, %v806_v21, 0.0 }
  0x4e   :  { %1118 = vrot.lane.b32.xlu0 %v800_v58, %s2960_s29  ;;  %1120 = vrot.lane.b32.xlu1 %v941_v59, %s2960_s29  ;;  %v253_v58 = vand.u32 15, %v79_v36  ;;  %v815_v59 = vrot.slane %v3396_v42, 1  ;;  %v808_v4 = vsel %vm761_vm0, %v805_v8, %v807_v46  ;;  %v810_v6 = vsel %vm761_vm0, %v807_v46, %v809_v10  ;;  %v3422_v8 = vld [vmem:[%s4297_s0 + $0xe8] sm:$0xff] }
  0x50   :  { %vm752_vm2 = vcmp.lt.s32.totalorder %v253_v58, 15  ;;  %v818_v17 = vsel %vm761_vm0, %v815_v59, %v817_v3 }
  0x51   :  { %v945_v21 = vsel %vm752_vm2, %v810_v6, 0.0  ;;  %v949_v10 = vsel %vm756_vm3, %v818_v17, 0.0 }
  0x52   :  { %994 = vrot.lane.b32.xlu0 %v40_v25, %s2959_s24  ;;  %1002 = vrot.lane.b32.xlu1 %v3331_v41, %s2959_s24  ;;  %v814_v25 = vsel %vm761_vm0, %v811_v15, %v813_v18  ;;  %v816_v15 = vsel %vm761_vm0, %v813_v18, %v815_v59  ;;  %v92_v18 = vand.u32 15, %v3026_v9  ;;  %v3450_v59 = vadd.s32 16, %v3026_v9 }
  0x53   :  { %v947_v30 = vsel %vm754_vm1, %v814_v25, 0.0  ;;  %v819_v25 = vrot.slane %v3422_v8, 1 }
  0x54   :  { %vm3435_vm4 = vcmp.gt.s32.totalorder %v92_v18, 0 }
  0x56   :  { %996 = vrot.lane.b32.xlu0 %v3311_v27, %s2959_s24  ;;  %1004 = vrot.lane.b32.xlu1 %v3319_v35, %s2959_s24 }
  0x5a   :  { %1122 = vrot.lane.b32.xlu0 %v804_v20, %s2960_s29  ;;  %1130 = vrot.lane.b32.xlu1 %v812_v24, %s2960_s29  ;;  %v85_v20 = vadd.s32 232, %v3026_v9  ;;  %v3427_v24 = vld [vmem:[%s4297_s0 + $0xf0] sm:$0xff] }
  0x5e   :  { %1124 = vrot.lane.b32.xlu0 %v943_v26, %s2960_s29  ;;  %1132 = vrot.lane.b32.xlu1 %v947_v30, %s2960_s29  ;;  %v295_v26 = vand.u32 15, %v85_v20  ;;  %v821_v30 = vrot.slane %v3427_v24, 1  ;;  %v106_v20 = vand.u32 15, %v3450_v59 }
  0x60   :  { %vm3444_vm6 = vcmp.lt.s32.totalorder %v295_v26, 15  ;;  %v822_v58 = vsel %vm761_vm0, %v819_v25, %v821_v30  ;;  %vm474_vm10 = vcmp.gt.s32.totalorder %v106_v20, 0 }
  0x61   :  { %v951_v17 = vsel %vm3444_vm6, %v822_v58, 0.0 }
  0x62   :  { %998 = vrot.lane.b32.xlu0 %v3357_v1, %s2959_s24  ;;  %1006 = vrot.lane.b32.xlu1 %v3365_v0, %s2959_s24 }
  0x66   :  { %1000 = vrot.lane.b32.xlu0 %v3388_v32, %s2959_s24  ;;  %1008 = vrot.lane.b32.xlu1 %v3396_v42, %s2959_s24 }
  0x6a   :  { %1126 = vrot.lane.b32.xlu0 %v808_v4, %s2960_s29  ;;  %1134 = vrot.lane.b32.xlu1 %v816_v15, %s2960_s29  ;;  %v820_v4 = vsel %vm761_vm0, %v817_v3, %v819_v25  ;;  %v697_v15 = vsel %vm3435_vm4, %v632_v45, 0.0  ;;  %v823_v3 = vrot.slane %v3457_v2, 1  ;;  %v3476_v45 = vadd.s32 32, %v3026_v9 }
  0x6c   :  { %v857_v36 = vsel %vm761_vm0, %v823_v3, 0.0  ;;  %v824_v46 = vsel %vm761_vm0, %v821_v30, %v823_v3 }
  0x6e   :  { %1128 = vrot.lane.b32.xlu0 %v945_v21, %s2960_s29  ;;  %1136 = vrot.lane.b32.xlu1 %v949_v10, %s2960_s29  ;;  %v309_v21 = vand.u32 15, %v87_v61  ;;  %v699_v61 = vsel %vm474_vm10, %v3169_v5, 0.0 }
  0x70   :  { %vm760_vm11 = vcmp.lt.s32.totalorder %v309_v21, 15 }
  0x72   :  { %1010 = vrot.lane.b32.xlu0 %v3403_v57, %s2959_s24  ;;  %1012 = vrot.lane.b32.xlu1 %v3422_v8, %s2959_s24 }
  0x74   :  { %v961_v51 = vpop.permute.xlu1 %960  ;;  %v955_v6 = vpop.permute.xlu0 %954 }
  0x75   :  { %v1179_v10 = vsel %vm1178_vm7, %v697_v15, %v955_v6  ;;  %v1182_v3 = vsel %vm1178_vm7, %v3124_v50, %v961_v51 }
  0x76   :  { %1138 = vrot.lane.b32.xlu0 %v820_v4, %s2960_s29  ;;  %1140 = vrot.lane.b32.xlu1 %v951_v17, %s2960_s29  ;;  %v953_v4 = vsel %vm760_vm11, %v857_v36, 0.0  ;;  %v120_v17 = vand.u32 15, %v3476_v45 }
  0x78   :  { %v957_v18 = vpop.permute.xlu0 %956  ;;  %v1083_v25 = vpop.permute.xlu1 %1082  ;;  %vm476_vm12 = vcmp.gt.s32.totalorder %v120_v17, 0 }
  0x79   :  { %v1212_v26 = vsel %vm1211_vm8, %v1179_v10, %v1083_v25  ;;  %v1180_v6 = vsel %vm1178_vm7, %v3155_v60, %v957_v18  ;;  %v3495_v10 = vadd.s32 48, %v3026_v9 }
  0x7a   :  { %1014 = vrot.lane.b32.xlu0 %v3427_v24, %s2959_s24  ;;  %2864 = vmatprep.mubr.msk.f32.mxu0 %vm4304_vm9, %v1212_v26  ;;  %v701_v26 = vsel %vm476_vm12, %v3203_v7, 0.0 }
  0x7b   :  { %1016 = vrot.lane.b32.xlu1 %v3457_v2, %s2959_s24 }
  0x7c   :  { %v959_v58 = vpop.permute.xlu0 %958  ;;  %v1085_v15 = vpop.permute.xlu1 %1084 }
  0x7d   :  { %v1213_v20 = vsel %vm1211_vm8, %v1180_v6, %v1085_v15  ;;  %v1181_v21 = vsel %vm1178_vm7, %v699_v61, %v959_v58  ;;  %v3507_v6 = vadd.s32 64, %v3026_v9 }
  0x7e   :  { %1142 = vrot.lane.b32.xlu0 %v824_v46, %s2960_s29  ;;  %2865 = vmatmul.mubr.msk.f32.vlgmr.msra.gmra.mrb[0].mxu0 %vm4304_vm9, %v1213_v20  ;;  %v134_v46 = vand.u32 15, %v3495_v10 }
  0x7f   :  { %1144 = vrot.lane.b32.xlu1 %v953_v4, %s2960_s29 }
  0x80   :  { %v1087_v30 = vpop.permute.xlu0 %1086  ;;  %v1089_v60 = vpop.permute.xlu1 %1088  ;;  %vm478_vm13 = vcmp.gt.s32.totalorder %v134_v46, 0 }
  0x81   :  { %v1214_v5 = vsel %vm1211_vm8, %v1181_v21, %v1087_v30  ;;  %v1215_v18 = vsel %vm1211_vm8, %v1182_v3, %v1089_v60  ;;  %v703_v17 = vsel %vm478_vm13, %v3213_v23, 0.0  ;;  %v148_v21 = vand.u32 15, %v3507_v6 }
  0x82   :  { %2867 = vmatprep.mubr.msk.f32.mxu0 %vm4304_vm9, %v1214_v5 }
  0x83   :  { %2868 = vmatmul.mubr.msk.f32.gmra.mrb[2].mxu0 %vm4304_vm9, %v1215_v18  ;;  %vm480_vm14 = vcmp.gt.s32.totalorder %v148_v21, 0  ;;  %v3519_v18 = vadd.s32 80, %v3026_v9 }
  0x84   :  { %v963_v25 = vpop.permute.xlu0 %962  ;;  %v965_v36 = vpop.permute.xlu1 %964 }
  0x85   :  { %v1183_v58 = vsel %vm1178_vm7, %v701_v26, %v963_v25  ;;  %v1184_v61 = vsel %vm1178_vm7, %v3206_v22, %v965_v36  ;;  %v705_v26 = vsel %vm480_vm14, %v3224_v33, 0.0  ;;  %v162_v46 = vand.u32 15, %v3519_v18 }
  0x87   :  { %vm482_vm15 = vcmp.gt.s32.totalorder %v162_v46, 0 }
  0x88   :  { %v1091_v50 = vpop.permute.xlu0 %1090  ;;  %v1093_v4 = vpop.permute.xlu1 %1092 }
  0x89   :  { %v1216_v51 = vsel %vm1211_vm8, %v1183_v58, %v1091_v50  ;;  %v1217_v7 = vsel %vm1211_vm8, %v1184_v61, %v1093_v4  ;;  %v3531_v4 = vadd.s32 96, %v3026_v9 }
  0x8a   :  { %2870 = vmatprep.mubr.msk.f32.mxu0 %vm4304_vm9, %v1216_v51 }
  0x8b   :  { %2871 = vmatmul.mubr.msk.f32.gmra.mrb[4].mxu0 %vm4304_vm9, %v1217_v7 }
  0x8c   :  { %v967_v15 = vpop.permute.xlu0 %966  ;;  %v969_v20 = vpop.permute.xlu1 %968 }
  0x8d   :  { %v1185_v30 = vsel %vm1178_vm7, %v703_v17, %v967_v15  ;;  %v1186_v3 = vsel %vm1178_vm7, %v3216_v28, %v969_v20  ;;  %v707_v15 = vsel %vm482_vm15, %v3239_v43, 0.0  ;;  %v176_v20 = vand.u32 15, %v3531_v4 }
  0x8f   :  { %vm484_vm1 = vcmp.gt.s32.totalorder %v176_v20, 0 }
  0x90   :  { %v1095_v22 = vpop.permute.xlu0 %1094  ;;  %v1097_v60 = vpop.permute.xlu1 %1096 }
  0x91   :  { %v1218_v5 = vsel %vm1211_vm8, %v1185_v30, %v1095_v22  ;;  %v1219_v23 = vsel %vm1211_vm8, %v1186_v3, %v1097_v60  ;;  %v3543_v3 = vadd.s32 112, %v3026_v9 }
  0x92   :  { %2873 = vmatprep.mubr.msk.f32.mxu0 %vm4304_vm9, %v1218_v5 }
  0x93   :  { %2874 = vmatmul.mubr.msk.f32.gmra.mrb[6].mxu0 %vm4304_vm9, %v1219_v23  ;;  %v709_v23 = vsel %vm484_vm1, %v3251_v47, 0.0 }
  0x94   :  { %v971_v25 = vpop.permute.xlu0 %970  ;;  %v973_v36 = vpop.permute.xlu1 %972 }
  0x95   :  { %v1187_v58 = vsel %vm1178_vm7, %v705_v26, %v971_v25  ;;  %v1188_v51 = vsel %vm1178_vm7, %v3227_v34, %v973_v36  ;;  %v190_v26 = vand.u32 15, %v3543_v3 }
  0x97   :  { %vm486_vm2 = vcmp.gt.s32.totalorder %v190_v26, 0 }
  0x98   :  { %v1099_v28 = vpop.permute.xlu0 %1098  ;;  %v1101_v61 = vpop.permute.xlu1 %1100 }
  0x99   :  { %v1220_v50 = vsel %vm1211_vm8, %v1187_v58, %v1099_v28  ;;  %v1221_v33 = vsel %vm1211_vm8, %v1188_v51, %v1101_v61  ;;  %v711_v61 = vsel %vm486_vm2, %v3261_v53, 0.0 }
  0x9a   :  { %2876 = vmatprep.mubr.msk.f32.mxu0 %vm4304_vm9, %v1220_v50  ;;  %v72_v50 = vadd.s32 128, %v3026_v9 }
  0x9b   :  { %2877 = vmatmul.mubr.msk.f32.gmra.mrb[8].mxu0 %vm4304_vm9, %v1221_v33 }
  0x9c   :  { %v975_v7 = vpop.permute.xlu0 %974  ;;  %v977_v17 = vpop.permute.xlu1 %976 }
  0x9d   :  { %v1189_v21 = vsel %vm1178_vm7, %v707_v15, %v975_v7  ;;  %v1190_v22 = vsel %vm1178_vm7, %v3242_v44, %v977_v17  ;;  %v204_v7 = vand.u32 15, %v72_v50 }
  0x9f   :  { %vm488_vm3 = vcmp.gt.s32.totalorder %v204_v7, 0 }
  0xa0   :  { %v1103_v34 = vpop.permute.xlu0 %1102  ;;  %v1105_v5 = vpop.permute.xlu1 %1104 }
  0xa1   :  { %v1222_v30 = vsel %vm1211_vm8, %v1189_v21, %v1103_v34  ;;  %v1223_v43 = vsel %vm1211_vm8, %v1190_v22, %v1105_v5  ;;  %v74_v34 = vadd.s32 144, %v3026_v9  ;;  %v713_v22 = vsel %vm488_vm3, %v3272_v62, 0.0 }
  0xa2   :  { %2879 = vmatprep.mubr.msk.f32.mxu0 %vm4304_vm9, %v1222_v30  ;;  %vm2467_vm3 = vcmask 1041408  }
  0xa3   :  { %2880 = vmatmul.mubr.msk.f32.gmra.mrb[10].mxu0 %vm4304_vm9, %v1223_v43  ;;  %v218_v43 = vand.u32 15, %v74_v34 }
  0xa4   :  { %v979_v60 = vpop.permute.xlu0 %978  ;;  %v981_v25 = vpop.permute.xlu1 %980 }
  0xa5   :  { %v1191_v36 = vsel %vm1178_vm7, %v709_v23, %v979_v60  ;;  %v1192_v58 = vsel %vm1178_vm7, %v3254_v48, %v981_v25  ;;  %vm490_vm4 = vcmp.gt.s32.totalorder %v218_v43, 0 }
  0xa6   :  { %v715_v62 = vsel %vm490_vm4, %v3291_v16, 0.0  ;;  %v582_v16 = vrot.slane %v3388_v32, 7 }
  0xa8   :  { %v1107_v44 = vpop.permute.xlu0 %1106  ;;  %v1109_v28 = vpop.permute.xlu1 %1108 }
  0xa9   :  { %v1224_v46 = vsel %vm1211_vm8, %v1191_v36, %v1107_v44  ;;  %v1225_v51 = vsel %vm1211_vm8, %v1192_v58, %v1109_v28  ;;  %v76_v58 = vadd.s32 160, %v3026_v9 }
  0xaa   :  { %2882 = vmatprep.mubr.msk.f32.mxu0 %vm4304_vm9, %v1224_v46 }
  0xab   :  { %2883 = vmatmul.mubr.msk.f32.gmra.mrb[12].mxu0 %vm4304_vm9, %v1225_v51  ;;  %v80_v51 = vadd.s32 192, %v3026_v9 }
  0xac   :  { %v983_v47 = vpop.permute.xlu0 %982  ;;  %v985_v33 = vpop.permute.xlu1 %984 }
  0xad   :  { %v1193_v15 = vsel %vm1178_vm7, %v711_v61, %v983_v47  ;;  %v1194_v20 = vsel %vm1178_vm7, %v3264_v55, %v985_v33  ;;  %v232_v33 = vand.u32 15, %v76_v58  ;;  %v588_v58 = vrot.slane %v3365_v0, 7 }
  0xaf   :  { %vm492_vm6 = vcmp.gt.s32.totalorder %v232_v33, 0 }
  0xb0   :  { %v1111_v17 = vpop.permute.xlu0 %1110  ;;  %v1113_v21 = vpop.permute.xlu1 %1112 }
  0xb1   :  { %v1226_v48 = vsel %vm1211_vm8, %v1193_v15, %v1111_v17  ;;  %v1227_v30 = vsel %vm1211_vm8, %v1194_v20, %v1113_v21  ;;  %v260_v17 = vand.u32 15, %v80_v51  ;;  %v585_v20 = vsel %vm536_vm5, %v582_v16, %v584_v49 }
  0xb2   :  { %2885 = vmatprep.mubr.msk.f32.mxu0 %vm4304_vm9, %v1226_v48  ;;  %v717_v21 = vsel %vm492_vm6, %v3325_v38, 0.0 }
  0xb3   :  { %2886 = vmatmul.mubr.msk.f32.gmra.mrb[14].mxu0 %vm4304_vm9, %v1227_v30  ;;  %vm496_vm10 = vcmp.gt.s32.totalorder %v260_v17, 0  ;;  %v592_v17 = vrot.slane %v3403_v57, 7  ;;  %v86_v57 = vadd.s32 240, %v3026_v9 }
  0xb4   :  { %v987_v53 = vpop.permute.xlu0 %986  ;;  %v989_v5 = vpop.permute.xlu1 %988  ;;  %v721_v30 = vsel %vm496_vm10, %v585_v20, 0.0 }
  0xb5   :  { %v1195_v60 = vsel %vm1178_vm7, %v713_v22, %v987_v53  ;;  %v1196_v25 = vsel %vm1178_vm7, %v3275_v63, %v989_v5 }
  0xb8   :  { %v1115_v23 = vpop.permute.xlu0 %1114  ;;  %v1117_v26 = vpop.permute.xlu1 %1116 }
  0xb9   :  { %v1228_v55 = vsel %vm1211_vm8, %v1195_v60, %v1115_v23  ;;  %v1229_v36 = vsel %vm1211_vm8, %v1196_v25, %v1117_v26  ;;  %v78_v60 = vadd.s32 176, %v3026_v9  ;;  %v82_v23 = vadd.s32 208, %v3026_v9 }
  0xba   :  { %2888 = vmatprep.mubr.msk.f32.mxu0 %vm4304_vm9, %v1228_v55 }
  0xbb   :  { %2889 = vmatmul.mubr.msk.f32.gmra.mrb[16].mxu0 %vm4304_vm9, %v1229_v36  ;;  %v246_v36 = vand.u32 15, %v78_v60  ;;  %v302_v60 = vand.u32 15, %v86_v57 }
  0xbc   :  { %v991_v44 = vpop.permute.xlu0 %990  ;;  %v993_v46 = vpop.permute.xlu1 %992 }
  0xbd   :  { %v1197_v28 = vsel %vm1178_vm7, %v715_v62, %v991_v44  ;;  %v1198_v47 = vsel %vm1178_vm7, %v3294_v11, %v993_v46  ;;  %v580_v44 = vrot.slane %v3357_v1, 7  ;;  %v274_v46 = vand.u32 15, %v82_v23 }
  0xbe   :  { %vm494_vm11 = vcmp.gt.s32.totalorder %v246_v36, 0  ;;  %vm502_vm14 = vcmp.gt.s32.totalorder %v302_v60, 0  ;;  %v598_v36 = vrot.slane %v3457_v2, 7 }
  0xbf   :  { %vm498_vm12 = vcmp.gt.s32.totalorder %v274_v46, 0  ;;  %v583_v27 = vsel %vm536_vm5, %v580_v44, %v582_v16 }
  0xc0   :  { %v1119_v50 = vpop.permute.xlu0 %1118  ;;  %v1121_v61 = vpop.permute.xlu1 %1120 }
  0xc1   :  { %v1230_v63 = vsel %vm1211_vm8, %v1197_v28, %v1119_v50  ;;  %v1231_v7 = vsel %vm1211_vm8, %v1198_v47, %v1121_v61  ;;  %v581_v28 = vsel %vm536_vm5, %v578_v31, %v580_v44  ;;  %v589_v50 = vsel %vm536_vm5, %v586_v37, %v588_v58 }
  0xc2   :  { %2891 = vmatprep.mubr.msk.f32.mxu0 %vm4304_vm9, %v1230_v63  ;;  %v719_v51 = vsel %vm494_vm11, %v581_v28, 0.0  ;;  %v84_v47 = vadd.s32 224, %v3026_v9  ;;  %v590_v61 = vrot.slane %v3396_v42, 7  ;;  %v723_v33 = vsel %vm498_vm12, %v589_v50, 0.0 }
  0xc3   :  { %2892 = vmatmul.mubr.msk.f32.gmra.mrb[18].mxu0 %vm4304_vm9, %v1231_v7 }
  0xc4   :  { %v995_v15 = vpop.permute.xlu0 %994  ;;  %v1003_v48 = vpop.permute.xlu1 %1002  ;;  %v288_v37 = vand.u32 15, %v84_v47 }
  0xc5   :  { %v1199_v53 = vsel %vm1178_vm7, %v717_v21, %v995_v15  ;;  %v1203_v5 = vsel %vm1178_vm7, %v721_v30, %v1003_v48  ;;  %v591_v48 = vsel %vm536_vm5, %v588_v58, %v590_v61  ;;  %v593_v30 = vsel %vm536_vm5, %v590_v61, %v592_v17 }
  0xc6   :  { %vm500_vm13 = vcmp.gt.s32.totalorder %v288_v37, 0 }
  0xc8   :  { %v997_v11 = vpop.permute.xlu0 %996  ;;  %v1005_v34 = vpop.permute.xlu1 %1004 }
  0xc9   :  { %v1200_v49 = vsel %vm1178_vm7, %v3337_v52, %v997_v11  ;;  %v1204_v25 = vsel %vm1178_vm7, %v3345_v56, %v1005_v34 }
  0xcc   :  { %v1123_v22 = vpop.permute.xlu0 %1122  ;;  %v1131_v43 = vpop.permute.xlu1 %1130 }
  0xcd   :  { %v1232_v32 = vsel %vm1211_vm8, %v1199_v53, %v1123_v22  ;;  %v1236_v41 = vsel %vm1211_vm8, %v1203_v5, %v1131_v43  ;;  %v594_v53 = vrot.slane %v3422_v8, 7  ;;  %v725_v5 = vsel %vm500_vm13, %v593_v30, 0.0 }
  0xce   :  { %2894 = vmatprep.mubr.msk.f32.mxu0 %vm4304_vm9, %v1232_v32  ;;  %2900 = vmatprep.mubr.msk.f32.mxu1 %vm4304_vm9, %v1236_v41  ;;  %v596_v41 = vrot.slane %v3427_v24, 7 }
  0xd0   :  { %v1125_v38 = vpop.permute.xlu0 %1124  ;;  %v1133_v26 = vpop.permute.xlu1 %1132  ;;  %v599_v46 = vsel %vm536_vm5, %v596_v41, %v598_v36 }
  0xd1   :  { %v1233_v55 = vsel %vm1211_vm8, %v1200_v49, %v1125_v38  ;;  %v1237_v62 = vsel %vm1211_vm8, %v1204_v25, %v1133_v26  ;;  %v595_v49 = vsel %vm536_vm5, %v592_v17, %v594_v53  ;;  %v597_v26 = vsel %vm536_vm5, %v594_v53, %v596_v41 }
  0xd2   :  { %2895 = vmatmul.mubr.msk.f32.gmra.mrb[20].mxu0 %vm4304_vm9, %v1233_v55  ;;  %2901 = vmatmul.mubr.msk.f32.vlgmr.msra.gmra.mrb[0].mxu1 %vm4304_vm9, %v1237_v62  ;;  %v727_v62 = vsel %vm502_vm14, %v597_v26, 0.0 }
  0xd4   :  { %v999_v52 = vpop.permute.xlu0 %998  ;;  %v1007_v56 = vpop.permute.xlu1 %1006 }
  0xd5   :  { %v1201_v0 = vsel %vm1178_vm7, %v719_v51, %v999_v52  ;;  %v1205_v15 = vsel %vm1178_vm7, %v723_v33, %v1007_v56  ;;  %v3653_v51 = vld [vmem:[%s4299_s2] ss:$0 sm:$0xff]  ;;  %s2962_s2 = smov 6  }
  0xd8   :  { %v1001_v1 = vpop.permute.xlu0 %1000  ;;  %v1009_v63 = vpop.permute.xlu1 %1008 }
  0xd9   :  { %v1202_v20 = vsel %vm1178_vm7, %v583_v27, %v1001_v1  ;;  %v1206_v21 = vsel %vm1178_vm7, %v591_v48, %v1009_v63 }
  0xdc   :  { %v1127_v7 = vpop.permute.xlu0 %1126  ;;  %v1135_v35 = vpop.permute.xlu1 %1134 }
  0xdd   :  { %v1234_v31 = vsel %vm1211_vm8, %v1201_v0, %v1127_v7  ;;  %v1238_v42 = vsel %vm1211_vm8, %v1205_v15, %v1135_v35 }
  0xde   :  { %2897 = vmatprep.mubr.msk.f32.mxu0 %vm4304_vm9, %v1234_v31  ;;  %2903 = vmatprep.mubr.msk.f32.mxu1 %vm4304_vm9, %v1238_v42 }
  0xe0   :  { %v1129_v11 = vpop.permute.xlu0 %1128  ;;  %v1137_v34 = vpop.permute.xlu1 %1136 }
  0xe1   :  { %v1235_v16 = vsel %vm1211_vm8, %v1202_v20, %v1129_v11  ;;  %v1239_v22 = vsel %vm1211_vm8, %v1206_v21, %v1137_v34 }
  0xe2   :  { %2898 = vmatmul.mubr.msk.f32.gmra.mrb[22].mxu0 %vm4304_vm9, %v1235_v16  ;;  %2904 = vmatmul.mubr.msk.f32.gmra.mrb[2].mxu1 %vm4304_vm9, %v1239_v22 }
  0xe4   :  { %v1011_v32 = vpop.permute.xlu0 %1010  ;;  %v1013_v43 = vpop.permute.xlu1 %1012 }
  0xe5   :  { %v1207_v38 = vsel %vm1178_vm7, %v725_v5, %v1011_v32  ;;  %v1208_v25 = vsel %vm1178_vm7, %v595_v49, %v1013_v43 }
  0xe8   :  { %v1139_v23 = vpop.permute.xlu0 %1138  ;;  %v1141_v8 = vpop.permute.xlu1 %1140 }
  0xe9   :  { %v1240_v55 = vsel %vm1211_vm8, %v1207_v38, %v1139_v23  ;;  %v1241_v44 = vsel %vm1211_vm8, %v1208_v25, %v1141_v8  ;;  %v1840_v23 = vand.u32 7, %v3026_v9 }
  0xea   :  { %2906 = vmatprep.mubr.msk.f32.mxu1 %vm4304_vm9, %v1240_v55 }
  0xeb   :  { %2907 = vmatmul.mubr.msk.f32.gmra.mrb[4].mxu1 %vm4304_vm9, %v1241_v44  ;;  %vm3853_vm6 = vcmp.lt.s32.totalorder %v1840_v23, 7 }
  0xec   :  { %v1015_v24 = vpop.permute.xlu0 %1014 }
  0xed   :  { %v1017_v52 = vpop.permute.xlu1 %1016  ;;  %v1209_v58 = vsel %vm1178_vm7, %v727_v62, %v1015_v24 }
  0xee   :  { %v1210_v50 = vsel %vm1178_vm7, %v599_v46, %v1017_v52  ;;  %vm1768_vm7 = vcmask 48128  }
  0xf0   :  { %v1143_v28 = vpop.permute.xlu0 %1142 }
  0xf1   :  { %v1242_v56 = vsel %vm1211_vm8, %v1209_v58, %v1143_v28  ;;  %v1145_v1 = vpop.permute.xlu1 %1144 }
  0xf2   :  { %2909 = vmatprep.mubr.msk.f32.mxu1 %vm4304_vm9, %v1242_v56  ;;  %v1243_v2 = vsel %vm1211_vm8, %v1210_v50, %v1145_v1  ;;  %vm3677_vm8 = vcmp.gt.s32.totalorder %v1840_v23, 0 }
  0xf3   :  { %2910 = vmatmul.mubr.msk.f32.gmra.mrb[6].mxu1 %vm4304_vm9, %v1243_v2 }
 0x151   :  { %v2866_v63 = vpop.f32.mrb[0].mxu0 }
 0x152   :  { %v1423_v47 = vadd.f32 %v2866_v63, %v3653_v51  ;;  %v1417_v61 = vpop.f32.mrb[1].mxu0  ;;  %v1847_v63 = vand.u32 7, %v3034_v12 }
 0x153   :  { %v1418_v33 = vadd.f32 %v3653_v51, %v1417_v61 }
 0x154   :  { %v1577_v0 = vmax.f32 %v1423_v47, 0.0  ;;  %vm3696_vm15 = vcmp.gt.s32.totalorder %v1847_v63, 0  ;;  %vm3908_vm12 = vcmp.lt.s32.totalorder %v1847_v63, 7 }
 0x155   :  { %v1576_v7 = vmax.f32 %v1418_v33, 0.0 }
 0x156   :  { %v2869_v27 = vpop.f32.mrb[2].mxu0  ;;  %v1641_v31 = vrot.slane %v1577_v0, 1 }
 0x157   :  { %v1433_v15 = vadd.f32 %v2869_v27, %v3653_v51  ;;  %v1427_v35 = vpop.f32.mrb[3].mxu0  ;;  %v1640_v37 = vrot.slane %v1576_v7, 1 }
 0x158   :  { %v1428_v17 = vadd.f32 %v3653_v51, %v1427_v35 }
 0x159   :  { %v1579_v48 = vmax.f32 %v1433_v15, 0.0  ;;  %v1642_v42 = vsel %vm761_vm0, %v1640_v37, %v1641_v31 }
 0x15a   :  { %v1578_v20 = vmax.f32 %v1428_v17, 0.0  ;;  %v1736_v11 = vmax.f32 %v1576_v7, %v1642_v42 }
 0x15b   :  { %v1645_v16 = vrot.slane %v1579_v48, 1 }
 0x15c   :  { %v1643_v21 = vrot.slane %v1578_v20, 1  ;;  %1769 = vst.msk [vmem:[#allocation2] sm:$0xff] %vm1768_vm7, %v1736_v11 }
 0x15e   :  { %v1644_v34 = vsel %vm761_vm0, %v1641_v31, %v1643_v21  ;;  %v1646_v30 = vsel %vm761_vm0, %v1643_v21, %v1645_v16  ;;  %v2872_v57 = vpop.f32.mrb[4].mxu0 }
 0x15f   :  { %v1737_v53 = vmax.f32 %v1577_v0, %v1644_v34  ;;  %v1738_v22 = vmax.f32 %v1578_v20, %v1646_v30  ;;  %v1443_v32 = vadd.f32 %v2872_v57, %v3653_v51  ;;  %v1437_v5 = vpop.f32.mrb[5].mxu0 }
 0x160   :  { %v1438_v43 = vadd.f32 %v3653_v51, %v1437_v5 }
 0x161   :  { %1770 = vst.msk [vmem:[#allocation2 + $0x8] sm:$0xff] %vm1768_vm7, %v1737_v53  ;;  %1771 = vst.msk [vmem:[#allocation2 + $0x10] sm:$0xff] %vm1768_vm7, %v1738_v22  ;;  %v1581_v60 = vmax.f32 %v1443_v32, 0.0  ;;  %v1854_v22 = vand.u32 7, %v3450_v59  ;;  %v1889_v53 = vand.u32 7, %v3070_v29 }
 0x162   :  { %v1580_v41 = vmax.f32 %v1438_v43, 0.0 }
 0x163   :  { %v1649_v49 = vrot.slane %v1581_v60, 1  ;;  %vm3729_vm1 = vcmp.gt.s32.totalorder %v1854_v22, 0 }
 0x164   :  { %v1647_v38 = vrot.slane %v1580_v41, 1 }
 0x166   :  { %v1648_v55 = vsel %vm761_vm0, %v1645_v16, %v1647_v38  ;;  %v1650_v25 = vsel %vm761_vm0, %v1647_v38, %v1649_v49  ;;  %v2875_v8 = vpop.f32.mrb[6].mxu0 }
 0x167   :  { %v1739_v26 = vmax.f32 %v1579_v48, %v1648_v55  ;;  %v1740_v36 = vmax.f32 %v1580_v41, %v1650_v25  ;;  %v1453_v44 = vadd.f32 %v2875_v8, %v3653_v51  ;;  %v1447_v24 = vpop.f32.mrb[7].mxu0 }
 0x168   :  { %v1448_v62 = vadd.f32 %v3653_v51, %v1447_v24  ;;  %v1801_v52 = vld [vmem:[#allocation2] ss:$2 sm:$0xff] }
 0x169   :  { %1772 = vst.msk [vmem:[#allocation2 + $0x18] sm:$0xff] %vm1768_vm7, %v1739_v26  ;;  %1773 = vst.msk [vmem:[#allocation2 + $0x20] sm:$0xff] %vm1768_vm7, %v1740_v36  ;;  %v1583_v46 = vmax.f32 %v1453_v44, 0.0  ;;  %2268 = vrot.lane.b32.xlu0 %v1801_v52, %s2962_s2  ;;  %v2060_v58 = vrot.slane %v1801_v52, 7  ;;  %v2172_v48 = vrot.slane %v1801_v52, 1  ;;  %v4360_v36 = vand.u32 7, %v3476_v45 }
 0x16a   :  { %v1582_v56 = vmax.f32 %v1448_v62, 0.0 }
 0x16b   :  { %v1653_v50 = vrot.slane %v1583_v46, 1  ;;  %v3682_v1 = vsel %vm536_vm5, 0.0, %v2060_v58 }
 0x16c   :  { %v1651_v2 = vrot.slane %v1582_v56, 1  ;;  %v2140_v47 = vsel %vm3677_vm8, %v3682_v1, 0.0 }
 0x16e   :  { %v1652_v61 = vsel %vm761_vm0, %v1649_v49, %v1651_v2  ;;  %v1654_v33 = vsel %vm761_vm0, %v1651_v2, %v1653_v50  ;;  %v2878_v0 = vpop.f32.mrb[8].mxu0 }
 0x16f   :  { %v1741_v7 = vmax.f32 %v1581_v60, %v1652_v61  ;;  %v1742_v27 = vmax.f32 %v1582_v56, %v1654_v33  ;;  %v1463_v31 = vadd.f32 %v2878_v0, %v3653_v51  ;;  %v1457_v15 = vpop.f32.mrb[9].mxu0 }
 0x170   :  { %v1458_v35 = vadd.f32 %v3653_v51, %v1457_v15  ;;  %v3692_v37 = vld [vmem:[#allocation2 + $0x10] ss:$2 sm:$0xff] }
 0x171   :  { %1774 = vst.msk [vmem:[#allocation2 + $0x28] sm:$0xff] %vm1768_vm7, %v1741_v7  ;;  %1775 = vst.msk [vmem:[#allocation2 + $0x30] sm:$0xff] %vm1768_vm7, %v1742_v27  ;;  %v1585_v42 = vmax.f32 %v1463_v31, 0.0  ;;  %2270 = vrot.lane.b32.xlu1 %v3692_v37, %s2962_s2  ;;  %v2061_v20 = vrot.slane %v3692_v37, 7  ;;  %v2173_v11 = vrot.slane %v3692_v37, 1 }
 0x172   :  { %v1584_v16 = vmax.f32 %v1458_v35, 0.0 }
 0x173   :  { %v1657_v21 = vrot.slane %v1585_v42, 1  ;;  %v3709_v34 = vsel %vm761_vm0, %v2172_v48, %v2173_v11  ;;  %v3712_v30 = vsel %vm536_vm5, %v2060_v58, %v2061_v20 }
 0x174   :  { %v1655_v57 = vrot.slane %v1584_v16, 1 }
 0x176   :  { %v1656_v32 = vsel %vm761_vm0, %v1653_v50, %v1655_v57  ;;  %v1658_v5 = vsel %vm761_vm0, %v1655_v57, %v1657_v21  ;;  %v2881_v43 = vpop.f32.mrb[10].mxu0 }
 0x177   :  { %v1743_v60 = vmax.f32 %v1583_v46, %v1656_v32  ;;  %v1744_v41 = vmax.f32 %v1584_v16, %v1658_v5  ;;  %v1473_v49 = vadd.f32 %v2881_v43, %v3653_v51  ;;  %v1467_v38 = vpop.f32.mrb[11].mxu0 }
 0x178   :  { %v1468_v55 = vadd.f32 %v3653_v51, %v1467_v38  ;;  %v3722_v25 = vld [vmem:[#allocation2 + $0x20] ss:$2 sm:$0xff] }
 0x179   :  { %1776 = vst.msk [vmem:[#allocation2 + $0x38] sm:$0xff] %vm1768_vm7, %v1743_v60  ;;  %1777 = vst.msk [vmem:[#allocation2 + $0x40] sm:$0xff] %vm1768_vm7, %v1744_v41  ;;  %v1587_v8 = vmax.f32 %v1473_v49, 0.0  ;;  %v4305_v26 = vrot.slane %v3722_v25, 7 }
 0x17a   :  { %v1586_v44 = vmax.f32 %v1468_v55, 0.0 }
 0x17b   :  { %v1661_v24 = vrot.slane %v1587_v8, 1  ;;  %v3736_v62 = vsel %vm536_vm5, %v2061_v20, %v4305_v26 }
 0x17c   :  { %v1659_v52 = vrot.slane %v1586_v44, 1 }
 0x17e   :  { %v1660_v58 = vsel %vm761_vm0, %v1657_v21, %v1659_v52  ;;  %v1662_v56 = vsel %vm761_vm0, %v1659_v52, %v1661_v24  ;;  %v2884_v50 = vpop.f32.mrb[12].mxu0 }
 0x17f   :  { %v1745_v2 = vmax.f32 %v1585_v42, %v1660_v58  ;;  %v1746_v61 = vmax.f32 %v1586_v44, %v1662_v56  ;;  %v1483_v33 = vadd.f32 %v2884_v50, %v3653_v51  ;;  %v1477_v0 = vpop.f32.mrb[13].mxu0 }
 0x180   :  { %v1478_v7 = vadd.f32 %v3653_v51, %v1477_v0 }
 0x181   :  { %1778 = vst.msk [vmem:[#allocation2 + $0x48] sm:$0xff] %vm1768_vm7, %v1745_v2  ;;  %1779 = vst.msk [vmem:[#allocation2 + $0x50] sm:$0xff] %vm1768_vm7, %v1746_v61  ;;  %v1589_v27 = vmax.f32 %v1483_v33, 0.0 }
 0x182   :  { %v1588_v31 = vmax.f32 %v1478_v7, 0.0 }
 0x183   :  { %v1665_v15 = vrot.slane %v1589_v27, 1 }
 0x184   :  { %v1663_v35 = vrot.slane %v1588_v31, 1 }
 0x186   :  { %v1664_v48 = vsel %vm761_vm0, %v1661_v24, %v1663_v35  ;;  %v1666_v20 = vsel %vm761_vm0, %v1663_v35, %v1665_v15  ;;  %v2887_v16 = vpop.f32.mrb[14].mxu0 }
 0x187   :  { %v1747_v42 = vmax.f32 %v1587_v8, %v1664_v48  ;;  %v1748_v21 = vmax.f32 %v1588_v31, %v1666_v20  ;;  %v1493_v57 = vadd.f32 %v2887_v16, %v3653_v51  ;;  %v1487_v32 = vpop.f32.mrb[15].mxu0 }
 0x188   :  { %v1488_v5 = vadd.f32 %v3653_v51, %v1487_v32 }
 0x189   :  { %1780 = vst.msk [vmem:[#allocation2 + $0x58] sm:$0xff] %vm1768_vm7, %v1747_v42  ;;  %1781 = vst.msk [vmem:[#allocation2 + $0x60] sm:$0xff] %vm1768_vm7, %v1748_v21  ;;  %v1591_v43 = vmax.f32 %v1493_v57, 0.0 }
 0x18a   :  { %v1590_v60 = vmax.f32 %v1488_v5, 0.0 }
 0x18b   :  { %v1669_v41 = vrot.slane %v1591_v43, 1 }
 0x18c   :  { %v1667_v49 = vrot.slane %v1590_v60, 1 }
 0x18e   :  { %v1668_v38 = vsel %vm761_vm0, %v1665_v15, %v1667_v49  ;;  %v1670_v55 = vsel %vm761_vm0, %v1667_v49, %v1669_v41  ;;  %v2890_v44 = vpop.f32.mrb[16].mxu0 }
 0x18f   :  { %v1749_v8 = vmax.f32 %v1589_v27, %v1668_v38  ;;  %v1750_v24 = vmax.f32 %v1590_v60, %v1670_v55  ;;  %v1503_v52 = vadd.f32 %v2890_v44, %v3653_v51  ;;  %v1497_v58 = vpop.f32.mrb[17].mxu0 }
 0x190   :  { %v1498_v56 = vadd.f32 %v3653_v51, %v1497_v58 }
 0x191   :  { %1782 = vst.msk [vmem:[#allocation2 + $0x68] sm:$0xff] %vm1768_vm7, %v1749_v8  ;;  %1783 = vst.msk [vmem:[#allocation2 + $0x70] sm:$0xff] %vm1768_vm7, %v1750_v24  ;;  %v1593_v50 = vmax.f32 %v1503_v52, 0.0 }
 0x192   :  { %v1592_v2 = vmax.f32 %v1498_v56, 0.0 }
 0x193   :  { %v1673_v61 = vrot.slane %v1593_v50, 1 }
 0x194   :  { %v1671_v33 = vrot.slane %v1592_v2, 1 }
 0x196   :  { %v1672_v0 = vsel %vm761_vm0, %v1669_v41, %v1671_v33  ;;  %v1674_v7 = vsel %vm761_vm0, %v1671_v33, %v1673_v61  ;;  %v2893_v31 = vpop.f32.mrb[18].mxu0 }
 0x197   :  { %v1751_v27 = vmax.f32 %v1591_v43, %v1672_v0  ;;  %v1752_v15 = vmax.f32 %v1592_v2, %v1674_v7  ;;  %v1513_v35 = vadd.f32 %v2893_v31, %v3653_v51  ;;  %v1507_v48 = vpop.f32.mrb[19].mxu0 }
 0x198   :  { %v1508_v20 = vadd.f32 %v3653_v51, %v1507_v48  ;;  %v4007_v26 = vld [vmem:[#allocation2 + $0x60] ss:$2 sm:$0xff] }
 0x199   :  { %1784 = vst.msk [vmem:[#allocation2 + $0x78] sm:$0xff] %vm1768_vm7, %v1751_v27  ;;  %1785 = vst.msk [vmem:[#allocation2 + $0x80] sm:$0xff] %vm1768_vm7, %v1752_v15  ;;  %v1595_v16 = vmax.f32 %v1513_v35, 0.0 }
 0x19a   :  { %v1594_v42 = vmax.f32 %v1508_v20, 0.0 }
 0x19b   :  { %v1677_v21 = vrot.slane %v1595_v16, 1 }
 0x19c   :  { %v1675_v57 = vrot.slane %v1594_v42, 1 }
 0x19e   :  { %v1676_v32 = vsel %vm761_vm0, %v1673_v61, %v1675_v57  ;;  %v1678_v5 = vsel %vm761_vm0, %v1675_v57, %v1677_v21 }
 0x19f   :  { %v1753_v60 = vmax.f32 %v1593_v50, %v1676_v32  ;;  %v1754_v43 = vmax.f32 %v1594_v42, %v1678_v5  ;;  %v1903_v42 = vand.u32 7, %v3098_v39 }
 0x1a1   :  { %1786 = vst.msk [vmem:[#allocation2 + $0x88] sm:$0xff] %vm1768_vm7, %v1753_v60  ;;  %1787 = vst.msk [vmem:[#allocation2 + $0x90] sm:$0xff] %vm1768_vm7, %v1754_v43  ;;  %vm3788_vm2 = vcmp.gt.s32.totalorder %v1903_v42, 0 }
 0x1a5   :  { %v2896_v41 = vpop.f32.mrb[20].mxu0  ;;  %v2902_v55 = vpop.f32.mrb[0].mxu1 }
 0x1a6   :  { %v1523_v49 = vadd.f32 %v2896_v41, %v3653_v51  ;;  %v1517_v38 = vpop.f32.mrb[21].mxu0  ;;  %v1543_v24 = vadd.f32 %v2902_v55, %v3653_v51  ;;  %v1537_v52 = vpop.f32.mrb[1].mxu1 }
 0x1a7   :  { %v1518_v44 = vadd.f32 %v3653_v51, %v1517_v38  ;;  %v1538_v56 = vadd.f32 %v3653_v51, %v1537_v52 }
 0x1a8   :  { %v1597_v8 = vmax.f32 %v1523_v49, 0.0  ;;  %v1601_v2 = vmax.f32 %v1543_v24, 0.0  ;;  %v3780_v32 = vld [vmem:[#allocation2 + $0x80] ss:$2 sm:$0xff] }
 0x1a9   :  { %v1596_v58 = vmax.f32 %v1518_v44, 0.0  ;;  %v1600_v33 = vmax.f32 %v1538_v56, 0.0  ;;  %v4303_v44 = vrot.slane %v3780_v32, 7 }
 0x1aa   :  { %v1681_v50 = vrot.slane %v1597_v8, 1  ;;  %v1689_v0 = vrot.slane %v1601_v2, 1 }
 0x1ab   :  { %v1679_v61 = vrot.slane %v1596_v58, 1  ;;  %v1687_v27 = vrot.slane %v1600_v33, 1 }
 0x1ad   :  { %v1680_v7 = vsel %vm761_vm0, %v1677_v21, %v1679_v61  ;;  %v1682_v31 = vsel %vm761_vm0, %v1679_v61, %v1681_v50  ;;  %v1690_v48 = vsel %vm761_vm0, %v1687_v27, %v1689_v0 }
 0x1ae   :  { %v1755_v15 = vmax.f32 %v1595_v16, %v1680_v7  ;;  %v1756_v35 = vmax.f32 %v1596_v58, %v1682_v31  ;;  %v1760_v20 = vmax.f32 %v1600_v33, %v1690_v48 }
 0x1b0   :  { %1788 = vst.msk [vmem:[#allocation2 + $0x98] sm:$0xff] %vm1768_vm7, %v1755_v15  ;;  %1789 = vst.msk [vmem:[#allocation2 + $0xa0] sm:$0xff] %vm1768_vm7, %v1756_v35 }
 0x1b1   :  { %1793 = vst.msk [vmem:[#allocation2 + $0xc0] sm:$0xff] %vm1768_vm7, %v1760_v20 }
 0x1b5   :  { %v2899_v57 = vpop.f32.mrb[22].mxu0  ;;  %v2905_v60 = vpop.f32.mrb[2].mxu1 }
 0x1b6   :  { %v1533_v21 = vadd.f32 %v2899_v57, %v3653_v51  ;;  %v1527_v5 = vpop.f32.mrb[23].mxu0  ;;  %v1553_v38 = vadd.f32 %v2905_v60, %v3653_v51  ;;  %v1547_v55 = vpop.f32.mrb[3].mxu1 }
 0x1b7   :  { %v1528_v16 = vadd.f32 %v3653_v51, %v1527_v5  ;;  %v3784_v43 = vld [vmem:[#allocation2 + $0x90] ss:$2 sm:$0xff]  ;;  %v1548_v58 = vadd.f32 %v3653_v51, %v1547_v55 }
 0x1b8   :  { %v1599_v49 = vmax.f32 %v1533_v21, 0.0  ;;  %v2077_v24 = vrot.slane %v3784_v43, 7  ;;  %v1603_v61 = vmax.f32 %v1553_v38, 0.0 }
 0x1b9   :  { %v1598_v52 = vmax.f32 %v1528_v16, 0.0  ;;  %v1602_v31 = vmax.f32 %v1548_v58, 0.0 }
 0x1ba   :  { %v1685_v56 = vrot.slane %v1599_v49, 1  ;;  %v3801_v33 = vsel %vm536_vm5, %v4303_v44, %v2077_v24  ;;  %v1693_v48 = vrot.slane %v1603_v61, 1 }
 0x1bb   :  { %v1683_v7 = vrot.slane %v1598_v52, 1  ;;  %v1691_v5 = vrot.slane %v1602_v31, 1 }
 0x1bc   :  { %v1688_v35 = vsel %vm761_vm0, %v1685_v56, %v1687_v27 }
 0x1bd   :  { %v1759_v20 = vmax.f32 %v1599_v49, %v1688_v35  ;;  %v1684_v57 = vsel %vm761_vm0, %v1681_v50, %v1683_v7  ;;  %v1686_v21 = vsel %vm761_vm0, %v1683_v7, %v1685_v56  ;;  %v1692_v38 = vsel %vm761_vm0, %v1689_v0, %v1691_v5 }
 0x1be   :  { %v1757_v60 = vmax.f32 %v1597_v8, %v1684_v57  ;;  %v1758_v16 = vmax.f32 %v1598_v52, %v1686_v21  ;;  %v1694_v55 = vsel %vm761_vm0, %v1691_v5, %v1693_v48  ;;  %v2908_v58 = vpop.f32.mrb[4].mxu1  ;;  %v1761_v27 = vmax.f32 %v1601_v2, %v1692_v38  ;;  %v1832_v2 = vld [vmem:[%s4300_s3] sm:$0xff]  ;;  %v1834_v21 = vld [vmem:[%s4300_s3 + $0x10] sm:$0x3] }
 0x1bf   :  { %1792 = vst.msk [vmem:[#allocation2 + $0xb8] sm:$0xff] %vm1768_vm7, %v1759_v20  ;;  %v1762_v49 = vmax.f32 %v1602_v31, %v1694_v55  ;;  %v3815_v50 = vadd.f32 %v2908_v58, %v3653_v51  ;;  %v1557_v56 = vpop.f32.mrb[5].mxu1  ;;  %v1910_v7 = vand.u32 7, %v3519_v18  ;;  %v1833_v31 = vld [vmem:[%s4300_s3 + $0x8] sm:$0xff]  ;;  %v1924_v5 = vand.u32 7, %v3531_v4  ;;  %s2963_s3 = smov 12  }
 0x1c0   :  { %1790 = vst.msk [vmem:[#allocation2 + $0xa8] sm:$0xff] %vm1768_vm7, %v1757_v60  ;;  %1791 = vst.msk [vmem:[#allocation2 + $0xb0] sm:$0xff] %vm1768_vm7, %v1758_v16  ;;  %v1558_v8 = vadd.f32 %v3653_v51, %v1557_v56  ;;  %v2948_v20 = vpack.c.bf16 %v1833_v31, %v1832_v2  ;;  %v1917_v60 = vand.u32 7, %v3135_v54 }
 0x1c1   :  { %1794 = vst.msk [vmem:[#allocation2 + $0xc8] sm:$0xff] %vm1768_vm7, %v1761_v27  ;;  %1795 = vst.msk [vmem:[#allocation2 + $0xd0] sm:$0xff] %vm1768_vm7, %v1762_v49  ;;  %v1605_v0 = vmax.f32 %v3815_v50, 0.0  ;;  %vm3841_vm4 = vcmp.gt.s32.totalorder %v1910_v7, 0  ;;  %vm3868_vm10 = vcmp.gt.s32.totalorder %v1924_v5, 0  ;;  %vm3915_vm13 = vcmp.lt.s32.totalorder %v1924_v5, 7 }
 0x1c2   :  { %v1604_v52 = vmax.f32 %v1558_v8, 0.0  ;;  %2949 = vmatprep.subr.bf16.mxu1 %v2948_v20  ;;  %vm3878_vm11 = vcmp.gt.s32.totalorder %v1917_v60, 0 }
 0x1c3   :  { %v1697_v35 = vrot.slane %v1605_v0, 1  ;;  %2951 = vmatpush3.bf16.msra.mxu1 %v2948_v20 }
 0x1c4   :  { %v1695_v57 = vrot.slane %v1604_v52, 1  ;;  %2916 = vmatprep.subr.msk.mxu1 %vm2467_vm3, %v1834_v21 }
 0x1c6   :  { %v1696_v16 = vsel %vm761_vm0, %v1693_v48, %v1695_v57  ;;  %v1698_v38 = vsel %vm761_vm0, %v1695_v57, %v1697_v35  ;;  %v2911_v55 = vpop.f32.mrb[6].mxu1 }
 0x1c7   :  { %v3835_v58 = vld [vmem:[#allocation2 + $0xa0] ss:$2 sm:$0xff]  ;;  %v3837_v27 = vld [vmem:[#allocation2 + $0xb0] ss:$2 sm:$0xff]  ;;  %v1763_v4 = vmax.f32 %v1603_v61, %v1696_v16  ;;  %v1764_v50 = vmax.f32 %v1604_v52, %v1698_v38  ;;  %v1573_v56 = vadd.f32 %v2911_v55, %v3653_v51  ;;  %v1567_v8 = vpop.f32.mrb[7].mxu1  ;;  %2917 = vmatpush3.msk.msra.mxu1 %vm2467_vm3, %v1834_v21  ;;  %v2175_v21 = vrot.slane %v3722_v25, 1 }
 0x1c8   :  { %v2079_v48 = vrot.slane %v3835_v58, 7  ;;  %v1568_v2 = vadd.f32 %v3653_v51, %v1567_v8  ;;  %v3849_v31 = vld [vmem:[#allocation2 + $0xc0] ss:$2 sm:$0xff]  ;;  %v2081_v61 = vrot.slane %v3837_v27, 7  ;;  %vm2158_vm3 = vcmp.lt.s32.totalorder %v1854_v22, 7 }
 0x1c9   :  { %1796 = vst.msk [vmem:[#allocation2 + $0xd8] sm:$0xff] %vm1768_vm7, %v1763_v4  ;;  %1797 = vst.msk [vmem:[#allocation2 + $0xe0] sm:$0xff] %vm1768_vm7, %v1764_v50  ;;  %v1607_v52 = vmax.f32 %v1573_v56, 0.0  ;;  %v2083_v57 = vrot.slane %v3849_v31, 7  ;;  %2292 = vrot.lane.b32.xlu0 %v3849_v31, %s2962_s2  ;;  %v1931_v4 = vand.u32 7, %v3187_v14  ;;  %v2195_v12 = vrot.slane %v3849_v31, 1 }
 0x1ca   :  { %v3866_v9 = vsel %vm536_vm5, %v2077_v24, %v2079_v48  ;;  %v1606_v51 = vmax.f32 %v1568_v2, 0.0  ;;  %v2252_v24 = vsel %vm3853_vm6, %v3709_v34, 0.0  ;;  %v3891_v8 = vsel %vm536_vm5, %v2079_v48, %v2081_v61  ;;  %v3903_v48 = vld [vmem:[#allocation2 + $0x30] ss:$2 sm:$0xff] }
 0x1cb   :  { %v1701_v55 = vrot.slane %v1607_v52, 1  ;;  %v3888_v56 = vsel %vm536_vm5, %v2081_v61, %v2083_v57  ;;  %vm3919_vm14 = vcmp.gt.s32.totalorder %v1931_v4, 0  ;;  %vm3953_vm6 = vcmp.lt.s32.totalorder %v1931_v4, 7 }
 0x1cc   :  { %v1699_v50 = vrot.slane %v1606_v51, 1  ;;  %v2189_v34 = vrot.slane %v3784_v43, 1  ;;  %v4371_v41 = vsel %vm3878_vm11, %v3891_v8, 0.0 }
 0x1cd   :  { %v1735_v2 = vsel %vm761_vm0, %v1701_v55, %v1607_v52  ;;  %2332 = vrot.lane.b32.xlu0 %v2252_v24, %s2963_s3 }
 0x1ce   :  { %v1767_v20 = vmax.f32 %v1607_v52, %v1735_v2  ;;  %v1700_v16 = vsel %vm761_vm0, %v1697_v35, %v1699_v50  ;;  %v1702_v15 = vsel %vm761_vm0, %v1699_v50, %v1701_v55  ;;  %v2176_v52 = vsel %vm761_vm0, %v2173_v11, %v2175_v21  ;;  %v3948_v55 = vld [vmem:[#allocation2 + $0x40] ss:$2 sm:$0xff]  ;;  %v3950_v50 = vld [vmem:[#allocation2 + $0x50] ss:$2 sm:$0xff] }
 0x1cf   :  { %v1765_v61 = vmax.f32 %v1605_v0, %v1700_v16  ;;  %v1766_v44 = vmax.f32 %v1606_v51, %v1702_v15  ;;  %v2177_v11 = vrot.slane %v3903_v48, 1  ;;  %v1938_v2 = vand.u32 7, %v3543_v3 }
 0x1d0   :  { %1800 = vst.msk [vmem:[#allocation2 + $0xf8] sm:$0xff] %vm1768_vm7, %v1767_v20  ;;  %v1827_v24 = vld [vmem:[#allocation2 + $0xd0] ss:$2 sm:$0xff]  ;;  %v1945_v20 = vand.u32 7, %v3233_v40  ;;  %v2179_v59 = vrot.slane %v3948_v55, 1  ;;  %v2181_v4 = vrot.slane %v3950_v50, 1 }
 0x1d1   :  { %1798 = vst.msk [vmem:[#allocation2 + $0xe8] sm:$0xff] %vm1768_vm7, %v1765_v61  ;;  %1799 = vst.msk [vmem:[#allocation2 + $0xf0] sm:$0xff] %vm1768_vm7, %v1766_v44  ;;  %2272 = vrot.lane.b32.xlu0 %v3722_v25, %s2962_s2  ;;  %v2085_v63 = vrot.slane %v1827_v24, 7  ;;  %v2197_v37 = vrot.slane %v1827_v24, 1  ;;  %2294 = vrot.lane.b32.xlu1 %v1827_v24, %s2962_s2  ;;  %v2253_v44 = vsel %vm3908_vm12, %v2176_v52, 0.0  ;;  %vm3974_vm12 = vcmp.gt.s32.totalorder %v1938_v2, 0 }
 0x1d3   :  { %v2198_v15 = vsel %vm761_vm0, %v2195_v12, %v2197_v37  ;;  %v3934_v5 = vsel %vm536_vm5, %v2083_v57, %v2085_v63  ;;  %v2178_v57 = vsel %vm761_vm0, %v2175_v21, %v2177_v11 }
 0x1d4   :  { %v2264_v51 = vsel %vm3915_vm13, %v2198_v15, 0.0  ;;  %v2254_v61 = vsel %vm2158_vm3, %v2178_v57, 0.0  ;;  %v4306_v15 = vand.u32 7, %v3037_v13  ;;  %vm3986_vm13 = vcmp.gt.s32.totalorder %v1945_v20, 0 }
 0x1d5   :  { %2334 = vrot.lane.b32.xlu1 %v2253_v44, %s2963_s3  ;;  %2356 = vrot.lane.b32.xlu0 %v2264_v51, %s2963_s3  ;;  %v4307_v44 = vand.u32 7, %v3476_v45  ;;  %v4375_v8 = vsel %vm3919_vm14, %v3934_v5, 0.0  ;;  %v4215_v51 = vld [vmem:[%s4301_s4] ss:$0 sm:$0xff] }
 0x1d6   :  { %vm2159_vm3 = vcmp.lt.s32.totalorder %v4306_v15, 7  ;;  %v4009_v15 = vld [vmem:[#allocation2 + $0x70] ss:$2 sm:$0xff] }
 0x1d7   :  { %vm2160_vm9 = vcmp.lt.s32.totalorder %v4307_v44, 7 }
 0x1d8   :  { %v3958_v24 = vld [vmem:[#allocation2 + $0xe0] ss:$2 sm:$0xff]  ;;  %v3961_v22 = vld [vmem:[#allocation2 + $0xf0] ss:$2 sm:$0xff] }
 0x1d9   :  { %2274 = vrot.lane.b32.xlu1 %v3903_v48, %s2962_s2  ;;  %2336 = vrot.lane.b32.xlu0 %v2254_v61, %s2963_s3  ;;  %v2199_v21 = vrot.slane %v3958_v24, 1  ;;  %v2087_v52 = vrot.slane %v3958_v24, 7  ;;  %v2089_v35 = vrot.slane %v3961_v22, 7 }
 0x1db   :  { %v2200_v57 = vsel %vm761_vm0, %v2197_v37, %v2199_v21  ;;  %v3982_v61 = vsel %vm536_vm5, %v2085_v63, %v2087_v52  ;;  %v2180_v63 = vsel %vm761_vm0, %v2177_v11, %v2179_v59  ;;  %v2182_v37 = vsel %vm761_vm0, %v2179_v59, %v2181_v4 }
 0x1dc   :  { %v2265_v14 = vsel %vm3953_vm6, %v2200_v57, 0.0  ;;  %v4005_v57 = vsel %vm536_vm5, %v2087_v52, %v2089_v35  ;;  %v2255_v44 = vsel %vm2159_vm3, %v2180_v63, 0.0  ;;  %v2256_v46 = vsel %vm2160_vm9, %v2182_v37, 0.0 }
 0x1dd   :  { %2358 = vrot.lane.b32.xlu1 %v2265_v14, %s2963_s3  ;;  %2276 = vrot.lane.b32.xlu0 %v3948_v55, %s2962_s2  ;;  %v2183_v11 = vrot.slane %v4007_v26, 1  ;;  %v2185_v59 = vrot.slane %v4009_v15, 1  ;;  %v4308_v52 = vand.u32 7, %v3047_v19  ;;  %v1882_v35 = vand.u32 7, %v3495_v10 }
 0x1de   :  { %v2187_v14 = vrot.slane %v3780_v32, 1  ;;  %vm2163_vm3 = vcmp.lt.s32.totalorder %v1889_v53, 7  ;;  %v4379_v0 = vsel %vm3986_vm13, %v4005_v57, 0.0 }
 0x1df   :  { %vm2161_vm9 = vcmp.lt.s32.totalorder %v4308_v52, 7  ;;  %vm2162_vm6 = vcmp.lt.s32.totalorder %v1882_v35, 7  ;;  %v1896_v52 = vand.u32 7, %v3507_v6 }
 0x1e1   :  { %2338 = vrot.lane.b32.xlu1 %v2255_v44, %s2963_s3  ;;  %2340 = vrot.lane.b32.xlu0 %v2256_v46, %s2963_s3  ;;  %v2184_v44 = vsel %vm761_vm0, %v2181_v4, %v2183_v11  ;;  %v2186_v46 = vsel %vm761_vm0, %v2183_v11, %v2185_v59  ;;  %v2188_v4 = vsel %vm761_vm0, %v2185_v59, %v2187_v14 }
 0x1e2   :  { %v2257_v63 = vsel %vm2161_vm9, %v2184_v44, 0.0  ;;  %v2258_v37 = vsel %vm2162_vm6, %v2186_v46, 0.0  ;;  %vm2164_vm9 = vcmp.lt.s32.totalorder %v1896_v52, 7  ;;  %v2190_v11 = vsel %vm761_vm0, %v2187_v14, %v2189_v34 }
 0x1e3   :  { %v2259_v44 = vsel %vm2163_vm3, %v2188_v4, 0.0  ;;  %v2260_v46 = vsel %vm2164_vm9, %v2190_v11, 0.0  ;;  %vm2166_vm6 = vcmp.lt.s32.totalorder %v1910_v7, 7  ;;  %vm2165_vm3 = vcmp.lt.s32.totalorder %v1903_v42, 7  ;;  %v2271_v31 = vpop.permute.xlu1 %2270 }
 0x1e4   :  { %vm2167_vm9 = vcmp.lt.s32.totalorder %v1917_v60, 7  ;;  %v2269_v60 = vpop.permute.xlu0 %2268 }
 0x1e5   :  { %2278 = vrot.lane.b32.xlu1 %v3950_v50, %s2962_s2  ;;  %2280 = vrot.lane.b32.xlu0 %v4007_v26, %s2962_s2 }
 0x1e9   :  { %2342 = vrot.lane.b32.xlu1 %v2257_v63, %s2963_s3  ;;  %2344 = vrot.lane.b32.xlu0 %v2258_v37, %s2963_s3  ;;  %v2191_v63 = vrot.slane %v3835_v58, 1  ;;  %v2193_v37 = vrot.slane %v3837_v27, 1 }
 0x1eb   :  { %v2194_v14 = vsel %vm761_vm0, %v2191_v63, %v2193_v37  ;;  %v2192_v4 = vsel %vm761_vm0, %v2189_v34, %v2191_v63  ;;  %v2196_v18 = vsel %vm761_vm0, %v2193_v37, %v2195_v12  ;;  %v2067_v34 = vrot.slane %v3948_v55, 7 }
 0x1ec   :  { %v2262_v59 = vsel %vm2166_vm6, %v2194_v14, 0.0  ;;  %v2261_v11 = vsel %vm2165_vm3, %v2192_v4, 0.0  ;;  %vm2170_vm6 = vcmp.lt.s32.totalorder %v1938_v2, 7  ;;  %v2263_v42 = vsel %vm2167_vm9, %v2196_v18, 0.0 }
 0x1ed   :  { %2282 = vrot.lane.b32.xlu1 %v4009_v15, %s2962_s2  ;;  %2284 = vrot.lane.b32.xlu0 %v3780_v32, %s2962_s2  ;;  %vm2171_vm3 = vcmp.lt.s32.totalorder %v1945_v20, 7  ;;  %vm2418_vm9 = vcmask 146432   ;;  %v4358_v37 = vand.u32 7, %v3037_v13  ;;  %v4359_v14 = vrot.slane %v3722_v25, 7 }
 0x1f1   :  { %2346 = vrot.lane.b32.xlu1 %v2259_v44, %s2963_s3  ;;  %2348 = vrot.lane.b32.xlu0 %v2260_v46, %s2963_s3  ;;  %v4356_v44 = vsel %vm3729_vm1, %v3736_v62, 0.0  ;;  %vm2032_vm1 = vcmp.gt.s32.totalorder %v4360_v36, 0 }
 0x1f5   :  { %2286 = vrot.lane.b32.xlu1 %v3784_v43, %s2962_s2  ;;  %2288 = vrot.lane.b32.xlu0 %v3835_v58, %s2962_s2  ;;  %v2201_v43 = vrot.slane %v3961_v22, 1 }
 0x1f7   :  { %v2202_v39 = vsel %vm761_vm0, %v2199_v21, %v2201_v43  ;;  %v2219_v54 = vsel %vm761_vm0, %v2201_v43, 0.0 }
 0x1f8   :  { %v2266_v7 = vsel %vm2170_vm6, %v2202_v39, 0.0  ;;  %v2267_v3 = vsel %vm2171_vm3, %v2219_v54, 0.0  ;;  %vm4353_vm6 = vcmask 97280   ;;  %vm2031_vm3 = vcmp.gt.s32.totalorder %v4358_v37, 0 }
 0x1f9   :  { %2290 = vrot.lane.b32.xlu1 %v3837_v27, %s2962_s2  ;;  %2352 = vrot.lane.b32.xlu0 %v2262_v59, %s2963_s3  ;;  %v2380_v27 = vsel %vm1768_vm7, %v2140_v47, %v2269_v60  ;;  %vm4355_vm8 = vmmov %vm4353_vm6  ;;  %v2065_v47 = vrot.slane %v3903_v48, 7  ;;  %v4362_v54 = vand.u32 7, %v3047_v19  ;;  %v2073_v19 = vrot.slane %v4009_v15, 7 }
 0x1fb   :  { %v2066_v48 = vsel %vm536_vm5, %v4359_v14, %v2065_v47  ;;  %v2068_v62 = vsel %vm536_vm5, %v2065_v47, %v2067_v34  ;;  %v4367_v14 = vsel %vm3788_vm2, %v3801_v33, 0.0 }
 0x1fc   :  { %v2143_v4 = vsel %vm2031_vm3, %v2066_v48, 0.0  ;;  %v2144_v43 = vsel %vm2032_vm1, %v2068_v62, 0.0  ;;  %vm2034_vm3 = vcmp.gt.s32.totalorder %v1882_v35, 0  ;;  %vm4363_vm1 = vmmov %vm4353_vm6  ;;  %v4368_v62 = vsel %vm3841_vm4, %v3866_v9, 0.0 }
 0x1fd   :  { %2350 = vrot.lane.b32.xlu1 %v2261_v11, %s2963_s3  ;;  %2296 = vrot.lane.b32.xlu0 %v3958_v24, %s2962_s2  ;;  %v4354_v24 = vsel %vm3696_vm15, %v3712_v30, 0.0  ;;  %vm4357_vm15 = vmmov %vm4353_vm6  ;;  %v2071_v11 = vrot.slane %v4007_v26, 7  ;;  %v4372_v9 = vsel %vm3868_vm10, %v3888_v56, 0.0 }
 0x1fe   :  { %vm4373_vm2 = vmmov %vm4363_vm1 }
 0x1ff   :  { %v2074_v10 = vsel %vm536_vm5, %v2071_v11, %v2073_v19  ;;  %vm4374_vm4 = vmmov %vm4363_vm1 }
 0x200   :  { %vm4376_vm10 = vmmov %vm4363_vm1 }
 0x201   :  { %2354 = vrot.lane.b32.xlu1 %v2263_v42, %s2963_s3  ;;  %2360 = vrot.lane.b32.xlu0 %v2266_v7, %s2963_s3  ;;  %v2069_v42 = vrot.slane %v3950_v50, 7  ;;  %vm4378_vm11 = vmmov %vm4363_vm1 }
 0x202   :  { %vm4380_vm14 = vmmov %vm4363_vm1 }
 0x203   :  { %v2070_v26 = vsel %vm536_vm5, %v2067_v34, %v2069_v42  ;;  %v2072_v60 = vsel %vm536_vm5, %v2069_v42, %v2071_v11  ;;  %vm4383_vm13 = vmmov %vm4363_vm1 }
 0x205   :  { %2298 = vrot.lane.b32.xlu1 %v3961_v22, %s2962_s2  ;;  %v2381_v22 = vsel %vm1768_vm7, %v4354_v24, %v2271_v31  ;;  %v2146_v31 = vsel %vm2034_vm3, %v2072_v60, 0.0  ;;  %vm4366_vm3 = vmmov %vm4363_vm1 }
 0x209   :  { %2362 = vrot.lane.b32.xlu1 %v2267_v3, %s2963_s3 }
 0x23b   :  { %v4085_v58 = vpop.permute.xlu0 %2292 }
 0x23f   :  { %v2333_v12 = vpop.permute.xlu0 %2332 }
 0x240   :  { %v2396_v40 = vsel %vm4353_vm6, %v2380_v27, %v2333_v12 }
 0x241   :  { %2918 = vmatprep.mubr.msk.f32.mxu1 %vm2418_vm9, %v2396_v40 }
 0x243   :  { %v2273_v2 = vpop.permute.xlu0 %2272  ;;  %v4094_v20 = vpop.permute.xlu1 %2294 }
 0x244   :  { %v2382_v17 = vsel %vm1768_vm7, %v4356_v44, %v2273_v2  ;;  %v2393_v23 = vsel %vm1768_vm7, %v4375_v8, %v4094_v20 }
 0x247   :  { %v2335_v28 = vpop.permute.xlu1 %2334  ;;  %v4101_v21 = vpop.permute.xlu0 %2356 }
 0x248   :  { %v2397_v1 = vsel %vm4355_vm8, %v2381_v22, %v2335_v28  ;;  %vm4361_vm8 = vmmov %vm4353_vm6 }
 0x249   :  { %2919 = vmatmul.mubr.msk.f32.vlgmr.msra.gmra.mrb[8].mxu1 %vm2418_vm9, %v2397_v1  ;;  %v4365_v1 = vrot.slane %v3780_v32, 7 }
 0x24b   :  { %v2275_v30 = vpop.permute.xlu1 %2274  ;;  %v2337_v46 = vpop.permute.xlu0 %2336  ;;  %v2076_v15 = vsel %vm536_vm5, %v2073_v19, %v4365_v1  ;;  %vm4369_vm5 = vmmov %vm4363_vm1 }
 0x24c   :  { %v2398_v63 = vsel %vm4357_vm15, %v2382_v17, %v2337_v46  ;;  %v2383_v18 = vsel %vm1768_vm7, %v2143_v4, %v2275_v30  ;;  %vm2033_vm15 = vcmp.gt.s32.totalorder %v4362_v54, 0 }
 0x24d   :  { %2921 = vmatprep.mubr.msk.f32.mxu1 %vm2418_vm9, %v2398_v63  ;;  %v2145_v27 = vsel %vm2033_vm15, %v2070_v26, 0.0  ;;  %vm2036_vm15 = vcmp.gt.s32.totalorder %v1896_v52, 0 }
 0x24e   :  { %v2148_v44 = vsel %vm2036_vm15, %v2076_v15, 0.0  ;;  %vm4386_vm15 = vmmov %vm4363_vm1 }
 0x24f   :  { %v4119_v55 = vpop.permute.xlu1 %2358  ;;  %v2277_v59 = vpop.permute.xlu0 %2276 }
 0x250   :  { %v2384_v13 = vsel %vm1768_vm7, %v2144_v43, %v2277_v59 }
 0x253   :  { %v2339_v39 = vpop.permute.xlu1 %2338  ;;  %v2341_v25 = vpop.permute.xlu0 %2340 }
 0x254   :  { %v2399_v7 = vsel %vm4353_vm6, %v2383_v18, %v2339_v39  ;;  %v2400_v45 = vsel %vm4361_vm8, %v2384_v13, %v2341_v25  ;;  %vm4364_vm6 = vmmov %vm4363_vm1  ;;  %vm2035_vm8 = vcmp.gt.s32.totalorder %v1889_v53, 0  ;;  %v2392_v18 = vsel %vm1768_vm7, %v4372_v9, %v4085_v58 }
 0x255   :  { %2922 = vmatmul.mubr.msk.f32.gmra.mrb[10].mxu1 %vm2418_vm9, %v2399_v7  ;;  %v2147_v34 = vsel %vm2035_vm8, %v2074_v10, 0.0  ;;  %v2408_v39 = vsel %vm4374_vm4, %v2392_v18, %v4101_v21  ;;  %v2409_v58 = vsel %vm4376_vm10, %v2393_v23, %v4119_v55  ;;  %v4377_v21 = vsel %vm3974_vm12, %v3982_v61, 0.0  ;;  %vm4382_vm12 = vmmov %vm4363_vm1 }
 0x256   :  { %2924 = vmatprep.mubr.msk.f32.mxu1 %vm2418_vm9, %v2400_v45  ;;  %vm4385_vm8 = vmmov %vm4363_vm1 }
 0x257   :  { %v2279_v3 = vpop.permute.xlu1 %2278  ;;  %v2281_v50 = vpop.permute.xlu0 %2280  ;;  %vm4391_vm4 = vmmov %vm4363_vm1 }
 0x258   :  { %v2385_v12 = vsel %vm1768_vm7, %v2145_v27, %v2279_v3  ;;  %v2386_v40 = vsel %vm1768_vm7, %v2146_v31, %v2281_v50  ;;  %vm4392_vm10 = vmmov %vm4363_vm1 }
 0x25b   :  { %v2343_v2 = vpop.permute.xlu1 %2342  ;;  %v2345_v24 = vpop.permute.xlu0 %2344 }
 0x25c   :  { %v2401_v22 = vsel %vm4363_vm1, %v2385_v12, %v2343_v2  ;;  %v2402_v28 = vsel %vm4364_vm6, %v2386_v40, %v2345_v24  ;;  %vm4370_vm6 = vmmov %vm4363_vm1 }
 0x25d   :  { %2925 = vmatmul.mubr.msk.f32.gmra.mrb[12].mxu1 %vm2418_vm9, %v2401_v22 }
 0x25e   :  { %2927 = vmatprep.mubr.msk.f32.mxu1 %vm2418_vm9, %v2402_v28 }
 0x25f   :  { %v2283_v35 = vpop.permute.xlu1 %2282  ;;  %v2285_v47 = vpop.permute.xlu0 %2284 }
 0x260   :  { %v2387_v17 = vsel %vm1768_vm7, %v2147_v34, %v2283_v35  ;;  %v2388_v30 = vsel %vm1768_vm7, %v2148_v44, %v2285_v47 }
 0x263   :  { %v2347_v46 = vpop.permute.xlu1 %2346  ;;  %v2349_v29 = vpop.permute.xlu0 %2348 }
 0x264   :  { %v2403_v53 = vsel %vm4366_vm3, %v2387_v17, %v2347_v46  ;;  %v2404_v63 = vsel %vm4363_vm1, %v2388_v30, %v2349_v29  ;;  %vm4387_vm3 = vmmov %vm4363_vm1 }
 0x265   :  { %2928 = vmatmul.mubr.msk.f32.gmra.mrb[14].mxu1 %vm2418_vm9, %v2403_v53 }
 0x266   :  { %2930 = vmatprep.mubr.msk.f32.mxu1 %vm2418_vm9, %v2404_v63 }
 0x267   :  { %v2287_v6 = vpop.permute.xlu1 %2286  ;;  %v2289_v32 = vpop.permute.xlu0 %2288 }
 0x268   :  { %v2389_v48 = vsel %vm1768_vm7, %v4367_v14, %v2287_v6  ;;  %v2390_v59 = vsel %vm1768_vm7, %v4368_v62, %v2289_v32 }
 0x26b   :  { %v2291_v52 = vpop.permute.xlu1 %2290  ;;  %v2353_v37 = vpop.permute.xlu0 %2352 }
 0x26c   :  { %v2406_v11 = vsel %vm4370_vm6, %v2390_v59, %v2353_v37  ;;  %v2391_v33 = vsel %vm1768_vm7, %v4371_v41, %v2291_v52  ;;  %vm4389_vm6 = vmmov %vm4363_vm1 }
 0x26f   :  { %v2351_v36 = vpop.permute.xlu1 %2350  ;;  %v2297_v43 = vpop.permute.xlu0 %2296 }
 0x270   :  { %v2405_v4 = vsel %vm4369_vm5, %v2389_v48, %v2351_v36  ;;  %v2394_v25 = vsel %vm1768_vm7, %v4377_v21, %v2297_v43  ;;  %vm4388_vm5 = vmmov %vm4363_vm1 }
 0x271   :  { %2931 = vmatmul.mubr.msk.f32.gmra.mrb[16].mxu1 %vm2418_vm9, %v2405_v4 }
 0x272   :  { %2933 = vmatprep.mubr.msk.f32.mxu1 %vm2418_vm9, %v2406_v11 }
 0x273   :  { %v2355_v49 = vpop.permute.xlu1 %2354  ;;  %v2361_v38 = vpop.permute.xlu0 %2360 }
 0x274   :  { %v2407_v13 = vsel %vm4373_vm2, %v2391_v33, %v2355_v49  ;;  %v2410_v42 = vsel %vm4378_vm11, %v2394_v25, %v2361_v38  ;;  %vm4390_vm2 = vmmov %vm4363_vm1 }
 0x275   :  { %2934 = vmatmul.mubr.msk.f32.gmra.mrb[18].mxu1 %vm2418_vm9, %v2407_v13  ;;  %vm4393_vm11 = vmmov %vm4363_vm1 }
 0x276   :  { %2936 = vmatprep.mubr.msk.f32.mxu1 %vm2418_vm9, %v2408_v39 }
 0x277   :  { %v2299_v56 = vpop.permute.xlu1 %2298 }
 0x278   :  { %v2395_v5 = vsel %vm1768_vm7, %v4379_v0, %v2299_v56  ;;  %vm4381_vm7 = vmmov %vm4363_vm1 }
 0x279   :  { %2937 = vmatmul.mubr.msk.f32.gmra.mrb[20].mxu1 %vm2418_vm9, %v2409_v58 }
 0x27a   :  { %2939 = vmatprep.mubr.msk.f32.mxu1 %vm2418_vm9, %v2410_v42 }
 0x27b   :  { %v2363_v20 = vpop.permute.xlu1 %2362 }
 0x27c   :  { %v2411_v55 = vsel %vm4380_vm14, %v2395_v5, %v2363_v20  ;;  %vm4394_vm14 = vmmov %vm4363_vm1 }
 0x27d   :  { %2940 = vmatmul.mubr.msk.f32.gmra.mrb[22].mxu1 %vm2418_vm9, %v2411_v55  ;;  %vm4384_vm9 = vmmov %vm4363_vm1 }
 0x31c   :  { %v2920_v61 = vpop.f32.mrb[8].mxu1 }
 0x31d   :  { %v2543_v7 = vadd.f32 %v2920_v61, %v4215_v51  ;;  %v2537_v45 = vpop.f32.mrb[9].mxu1 }
 0x31e   :  { %v2538_v16 = vadd.f32 %v4215_v51, %v2537_v45 }
 0x31f   :  { %v2617_v54 = vmax.f32 %v2543_v7, 0.0 }
 0x320   :  { %v2616_v57 = vmax.f32 %v2538_v16, 0.0 }
 0x321   :  { %v2649_v26 = vrot.slane %v2617_v54, 1 }
 0x322   :  { %v2648_v3 = vrot.slane %v2616_v57, 1 }
 0x324   :  { %v2650_v60 = vsel %vm761_vm0, %v2648_v3, %v2649_v26 }
 0x325   :  { %v2696_v50 = vmax.f32 %v2616_v57, %v2650_v60 }
 0x327   :  { %2712 = vst.msk [vmem:[#allocation3] sm:$0xff] %vm4381_vm7, %v2696_v50  ;;  %vm4395_vm7 = vmmov %vm4363_vm1 }
 0x328   :  { %v2923_v27 = vpop.f32.mrb[10].mxu1 }
 0x329   :  { %v2553_v31 = vadd.f32 %v2923_v27, %v4215_v51  ;;  %v2547_v12 = vpop.f32.mrb[11].mxu1 }
 0x32a   :  { %v2548_v40 = vadd.f32 %v4215_v51, %v2547_v12 }
 0x32b   :  { %v2619_v2 = vmax.f32 %v2553_v31, 0.0 }
 0x32c   :  { %v2618_v24 = vmax.f32 %v2548_v40, 0.0 }
 0x32d   :  { %v2653_v19 = vrot.slane %v2619_v2, 1 }
 0x32e   :  { %v2651_v22 = vrot.slane %v2618_v24, 1 }
 0x330   :  { %v2652_v28 = vsel %vm761_vm0, %v2649_v26, %v2651_v22  ;;  %v2654_v10 = vsel %vm761_vm0, %v2651_v22, %v2653_v19  ;;  %v2926_v35 = vpop.f32.mrb[12].mxu1 }
 0x331   :  { %v2697_v1 = vmax.f32 %v2617_v54, %v2652_v28  ;;  %v2698_v15 = vmax.f32 %v2618_v24, %v2654_v10  ;;  %v2563_v47 = vadd.f32 %v2926_v35, %v4215_v51  ;;  %v2557_v34 = vpop.f32.mrb[13].mxu1 }
 0x332   :  { %v2558_v44 = vadd.f32 %v4215_v51, %v2557_v34 }
 0x333   :  { %2713 = vst.msk [vmem:[#allocation3 + $0x8] sm:$0xff] %vm4382_vm12, %v2697_v1  ;;  %v2621_v17 = vmax.f32 %v2563_v47, 0.0  ;;  %vm4396_vm12 = vmmov %vm4363_vm1 }
 0x334   :  { %2714 = vst.msk [vmem:[#allocation3 + $0x10] sm:$0xff] %vm4383_vm13, %v2698_v15  ;;  %v2620_v30 = vmax.f32 %v2558_v44, 0.0  ;;  %vm4397_vm13 = vmmov %vm4363_vm1 }
 0x335   :  { %v2657_v46 = vrot.slane %v2621_v17, 1 }
 0x336   :  { %v2655_v29 = vrot.slane %v2620_v30, 1 }
 0x338   :  { %v2656_v53 = vsel %vm761_vm0, %v2653_v19, %v2655_v29  ;;  %v2658_v63 = vsel %vm761_vm0, %v2655_v29, %v2657_v46  ;;  %v2929_v6 = vpop.f32.mrb[14].mxu1 }
 0x339   :  { %v2699_v32 = vmax.f32 %v2619_v2, %v2656_v53  ;;  %v2700_v52 = vmax.f32 %v2620_v30, %v2658_v63  ;;  %v2573_v37 = vadd.f32 %v2929_v6, %v4215_v51  ;;  %v2567_v14 = vpop.f32.mrb[15].mxu1 }
 0x33a   :  { %v2728_v48 = vld [vmem:[#allocation3] ss:$2 sm:$0xff]  ;;  %v2568_v36 = vadd.f32 %v4215_v51, %v2567_v14 }
 0x33b   :  { %2743 = vst.msk [vmem:[%s4302_s5] sm:$0xff] %vm4384_vm9, %v2728_v48  ;;  %v2623_v62 = vmax.f32 %v2573_v37, 0.0  ;;  %vm4398_vm9 = vmmov %vm4363_vm1 }
 0x33c   :  { %2715 = vst.msk [vmem:[#allocation3 + $0x18] sm:$0xff] %vm4385_vm8, %v2699_v32  ;;  %v2622_v59 = vmax.f32 %v2568_v36, 0.0  ;;  %vm4399_vm8 = vmmov %vm4363_vm1 }
 0x33d   :  { %2716 = vst.msk [vmem:[#allocation3 + $0x20] sm:$0xff] %vm4386_vm15, %v2700_v52  ;;  %v2661_v4 = vrot.slane %v2623_v62, 1  ;;  %vm4400_vm15 = vmmov %vm4363_vm1 }
 0x33e   :  { %v2659_v43 = vrot.slane %v2622_v59, 1 }
 0x340   :  { %v2660_v11 = vsel %vm761_vm0, %v2657_v46, %v2659_v43  ;;  %v2662_v41 = vsel %vm761_vm0, %v2659_v43, %v2661_v4 }
 0x341   :  { %v2701_v33 = vmax.f32 %v2621_v17, %v2660_v11  ;;  %v2702_v49 = vmax.f32 %v2622_v59, %v2662_v41 }
 0x343   :  { %v2730_v9 = vld [vmem:[#allocation3 + $0x10] ss:$2 sm:$0xff]  ;;  %2717 = vst.msk [vmem:[#allocation3 + $0x28] sm:$0xff] %vm4363_vm1, %v2701_v33 }
 0x344   :  { %2744 = vst.msk [vmem:[%s4302_s5 + $0x8] sm:$0xff] %vm4387_vm3, %v2730_v9  ;;  %v2932_v18 = vpop.f32.mrb[16].mxu1  ;;  %vm4401_vm3 = vmmov %vm4363_vm1 }
 0x345   :  { %2718 = vst.msk [vmem:[#allocation3 + $0x30] sm:$0xff] %vm4388_vm5, %v2702_v49  ;;  %v2583_v13 = vadd.f32 %v2932_v18, %v4215_v51  ;;  %v2577_v39 = vpop.f32.mrb[17].mxu1 }
 0x346   :  { %v2578_v38 = vadd.f32 %v4215_v51, %v2577_v39 }
 0x347   :  { %v2625_v8 = vmax.f32 %v2583_v13, 0.0 }
 0x348   :  { %v2624_v23 = vmax.f32 %v2578_v38, 0.0  ;;  %v2935_v56 = vpop.f32.mrb[18].mxu1 }
 0x349   :  { %v2665_v58 = vrot.slane %v2625_v8, 1  ;;  %v2593_v21 = vadd.f32 %v2935_v56, %v4215_v51  ;;  %v2587_v25 = vpop.f32.mrb[19].mxu1 }
 0x34a   :  { %v2732_v42 = vld [vmem:[#allocation3 + $0x20] ss:$2 sm:$0xff]  ;;  %v2663_v0 = vrot.slane %v2624_v23, 1  ;;  %v2588_v5 = vadd.f32 %v4215_v51, %v2587_v25 }
 0x34b   :  { %2745 = vst.msk [vmem:[%s4302_s5 + $0x10] sm:$0xff] %vm4389_vm6, %v2732_v42  ;;  %v2627_v20 = vmax.f32 %v2593_v21, 0.0 }
 0x34c   :  { %v2664_v55 = vsel %vm761_vm0, %v2661_v4, %v2663_v0  ;;  %v2666_v61 = vsel %vm761_vm0, %v2663_v0, %v2665_v58  ;;  %v2626_v7 = vmax.f32 %v2588_v5, 0.0  ;;  %v2938_v45 = vpop.f32.mrb[20].mxu1 }
 0x34d   :  { %v2703_v16 = vmax.f32 %v2623_v62, %v2664_v55  ;;  %v2704_v54 = vmax.f32 %v2624_v23, %v2666_v61  ;;  %v2669_v57 = vrot.slane %v2627_v20, 1  ;;  %v2603_v26 = vadd.f32 %v2938_v45, %v4215_v51  ;;  %v2597_v3 = vpop.f32.mrb[21].mxu1 }
 0x34e   :  { %v2667_v60 = vrot.slane %v2626_v7, 1  ;;  %v2598_v50 = vadd.f32 %v4215_v51, %v2597_v3 }
 0x34f   :  { %2719 = vst.msk [vmem:[#allocation3 + $0x38] sm:$0xff] %vm4390_vm2, %v2703_v16  ;;  %v2629_v27 = vmax.f32 %v2603_v26, 0.0 }
 0x350   :  { %2720 = vst.msk [vmem:[#allocation3 + $0x40] sm:$0xff] %vm4391_vm4, %v2704_v54  ;;  %v2668_v31 = vsel %vm761_vm0, %v2665_v58, %v2667_v60  ;;  %v2670_v12 = vsel %vm761_vm0, %v2667_v60, %v2669_v57  ;;  %v2628_v40 = vmax.f32 %v2598_v50, 0.0  ;;  %v2941_v2 = vpop.f32.mrb[22].mxu1 }
 0x351   :  { %v2705_v24 = vmax.f32 %v2625_v8, %v2668_v31  ;;  %v2706_v19 = vmax.f32 %v2626_v7, %v2670_v12  ;;  %v2673_v22 = vrot.slane %v2629_v27, 1  ;;  %v2613_v28 = vadd.f32 %v2941_v2, %v4215_v51  ;;  %v2607_v10 = vpop.f32.mrb[23].mxu1 }
 0x352   :  { %v2671_v35 = vrot.slane %v2628_v40, 1  ;;  %v2608_v1 = vadd.f32 %v4215_v51, %v2607_v10 }
 0x353   :  { %2721 = vst.msk [vmem:[#allocation3 + $0x48] sm:$0xff] %vm4392_vm10, %v2705_v24  ;;  %v2631_v15 = vmax.f32 %v2613_v28, 0.0 }
 0x354   :  { %2722 = vst.msk [vmem:[#allocation3 + $0x50] sm:$0xff] %vm4393_vm11, %v2706_v19  ;;  %v2672_v47 = vsel %vm761_vm0, %v2669_v57, %v2671_v35  ;;  %v2674_v34 = vsel %vm761_vm0, %v2671_v35, %v2673_v22  ;;  %v2630_v44 = vmax.f32 %v2608_v1, 0.0 }
 0x355   :  { %v2707_v17 = vmax.f32 %v2627_v20, %v2672_v47  ;;  %v2708_v30 = vmax.f32 %v2628_v40, %v2674_v34  ;;  %v2677_v46 = vrot.slane %v2631_v15, 1 }
 0x356   :  { %v2734_v29 = vld [vmem:[#allocation3 + $0x30] ss:$2 sm:$0xff]  ;;  %v2675_v53 = vrot.slane %v2630_v44, 1 }
 0x357   :  { %2746 = vst.msk [vmem:[%s4302_s5 + $0x18] sm:$0xff] %vm4394_vm14, %v2734_v29  ;;  %v2695_v51 = vsel %vm761_vm0, %v2677_v46, %v2631_v15 }
 0x358   :  { %2723 = vst.msk [vmem:[#allocation3 + $0x58] sm:$0xff] %vm4395_vm7, %v2707_v17  ;;  %v2711_v63 = vmax.f32 %v2631_v15, %v2695_v51  ;;  %v2676_v6 = vsel %vm761_vm0, %v2673_v22, %v2675_v53  ;;  %v2678_v32 = vsel %vm761_vm0, %v2675_v53, %v2677_v46  ;;  %vm4402_vm0 = vmmov %vm4363_vm1 }
 0x359   :  { %2724 = vst.msk [vmem:[#allocation3 + $0x60] sm:$0xff] %vm4396_vm12, %v2708_v30  ;;  %v2709_v52 = vmax.f32 %v2629_v27, %v2676_v6  ;;  %v2710_v37 = vmax.f32 %v2630_v44, %v2678_v32  ;;  %vm4403_vm1 = vmmov %vm4402_vm0 }
 0x35a   :  { %v2736_v14 = vld [vmem:[#allocation3 + $0x40] ss:$2 sm:$0xff]  ;;  %2727 = vst.msk [vmem:[#allocation3 + $0x78] sm:$0xff] %vm4397_vm13, %v2711_v63 }
 0x35b   :  { %2747 = vst.msk [vmem:[%s4302_s5 + $0x20] sm:$0xff] %vm4398_vm9, %v2736_v14 }
 0x35c   :  { %2725 = vst.msk [vmem:[#allocation3 + $0x68] sm:$0xff] %vm4399_vm8, %v2709_v52 }
 0x35d   :  { %2726 = vst.msk [vmem:[#allocation3 + $0x70] sm:$0xff] %vm4400_vm15, %v2710_v37 }
 0x35f   :  { %v2738_v48 = vld [vmem:[#allocation3 + $0x50] ss:$2 sm:$0xff] }
 0x360   :  { %2748 = vst.msk [vmem:[%s4302_s5 + $0x28] sm:$0xff] %vm4401_vm3, %v2738_v48 }
 0x363   :  { %v2740_v36 = vld [vmem:[#allocation3 + $0x60] ss:$2 sm:$0xff] }
 0x364   :  { %v2742_v62 = vld [vmem:[#allocation3 + $0x70] ss:$2 sm:$0xff]  ;;  %2749 = vst.msk [vmem:[%s4302_s5 + $0x30] sm:$0xff] %vm4402_vm0, %v2740_v36 }
 0x365   :  { %2750 = vst.msk [vmem:[%s4302_s5 + $0x38] sm:$0xff] %vm4403_vm1, %v2742_v62 }

</bundles_post_ra>
